<compile_context>
chip_gen: v7x
topology: tpu7x:2x2x1
jax: 0.10.0
libtpu: 0.0.40
codegen_flags: <defaults>
</compile_context>

<pallas_src>
import functools

import jax
import jax.numpy as jnp
import numpy as np
from jax.experimental import pallas as pl
from jax.experimental.pallas import tpu as pltpu

_LANE = 128
_SUB = 16  # bf16 sublane packing; keeps every reshape merge layout-free


def _round_up(x, m):
    return (x + m - 1) // m * m


def textcnn_kernel(idx_ref, emb_ref, convw_ref, convb_ref, fcw_ref, fcb_ref, out_ref,
                   *, K, L_out, L_out_pad, KE_pad):
    """Per batch tile: embed (one-hot MXU gather) -> im2col conv -> max-pool -> bias+ReLU -> FC."""
    bt, L_pad = idx_ref.shape
    V_pad, E = emb_ref.shape
    c_pad = convw_ref.shape[1]

    # ---- Embedding lookup fused in-kernel as a one-hot MXU matmul (exact row select). ----
    idx = idx_ref[...]                                                   # (bt, L_pad) i32
    viota = jax.lax.broadcasted_iota(jnp.int32, (bt, L_pad, V_pad), 2)
    onehot = (idx[:, :, None] == viota).astype(jnp.bfloat16)            # (bt, L_pad, V_pad)
    emb = jnp.dot(onehot.reshape(bt * L_pad, V_pad), emb_ref[...],
                  preferred_element_type=jnp.float32)                   # exact bf16 table rows
    emb = emb.astype(jnp.bfloat16).reshape(bt, L_pad, E)

    # ---- Lane-padded im2col slab: K shifted time windows + zero lanes, one concat. ----
    parts = [emb[:, k:k + L_out_pad, :] for k in range(K)]
    lane_pad = KE_pad - K * E
    if lane_pad:
        parts.append(jnp.zeros((bt, L_out_pad, lane_pad), jnp.bfloat16))
    slab = jnp.concatenate(parts, axis=2).reshape(bt * L_out_pad, KE_pad)

    # ---- Whole Conv1d as one MXU matmul, f32 accumulation. ----
    acc = jnp.dot(slab, convw_ref[...], preferred_element_type=jnp.float32)
    acc = acc.reshape(bt, L_out_pad, c_pad)

    # ---- Additive time mask (one VPU add pass) then global max-pool over time (XLU). ----
    t = jax.lax.broadcasted_iota(jnp.int32, (1, L_out_pad, 1), 1)
    tmask = jnp.where(t < L_out, 0.0, -1e30).astype(jnp.float32)
    pooled = jnp.max(acc + tmask, axis=1)                               # (bt, c_pad)

    # Bias + ReLU commute past the max: max_t(relu(x+b)) == relu(max_t(x)+b).
    pooled = jnp.maximum(pooled + convb_ref[...], 0.0)

    # TODO(synk): dropout omitted -- inference (identity) semantics.
    logits = jnp.dot(pooled, fcw_ref[...], preferred_element_type=jnp.float32) + fcb_ref[...]
    out_ref[...] = logits                                               # lane-dense (bt, nc_pad)


def prepare_params(emb_table, conv_w, conv_b, fc_w, fc_b):
    """One-time re-layout of PyTorch weights into padded, MXU-friendly tensors."""
    C, E, K = conv_w.shape
    NC = fc_w.shape[0]
    V = emb_table.shape[0]
    KE = K * E
    ke_pad = _round_up(KE, _LANE)
    c_pad = _round_up(C, _LANE)
    nc_pad = _round_up(NC, _LANE)
    v_pad = _round_up(V, _LANE)

    # Embedding table, bf16, padded vocab rows are zero (never selected by the one-hot).
    emb_p = jnp.zeros((v_pad, E), jnp.bfloat16).at[:V, :].set(emb_table.astype(jnp.bfloat16))

    # Conv1d weight (C, E, K) -> im2col (K*E, C): W2[k*E+e, c] = W[c, e, k].
    w2 = jnp.transpose(conv_w, (2, 1, 0)).reshape(KE, C).astype(jnp.bfloat16)
    conv_w_p = jnp.zeros((ke_pad, c_pad), jnp.bfloat16).at[:KE, :C].set(w2)
    conv_b_p = jnp.zeros((1, c_pad), jnp.float32).at[0, :C].set(conv_b.astype(jnp.float32))

    # Linear weight kept in f32 (tiny matmul; tighter parity with the f32 reference).
    fc_w_p = jnp.zeros((c_pad, nc_pad), jnp.float32).at[:C, :NC].set(
        jnp.transpose(fc_w, (1, 0)).astype(jnp.float32))
    fc_b_p = jnp.zeros((1, nc_pad), jnp.float32).at[0, :NC].set(fc_b.astype(jnp.float32))

    return {"emb_table": emb_p, "conv_w": conv_w_p, "conv_b": conv_b_p,
            "fc_w": fc_w_p, "fc_b": fc_b_p, "kernel_size": K, "num_classes": NC}


@functools.partial(jax.jit, static_argnames=("kernel_size", "num_classes", "b_tile"))
def textcnn_forward(text_indices, emb_table, conv_w, conv_b, fc_w, fc_b,
                    *, kernel_size, num_classes, b_tile=256):
    B, L = text_indices.shape
    V_pad, E = emb_table.shape
    K = kernel_size
    KE_pad, C_pad = conv_w.shape
    NC_pad = fc_w.shape[1]
    if L < K:
        raise ValueError(f"seq_len={L} must be >= kernel_size={K}")
    L_out = L - K + 1
    L_out_pad = _round_up(L_out, _SUB)           # sublane-aligned time for reshape + pool
    L_pad = _round_up(L_out_pad + K - 1, _SUB)   # every im2col window stays in-bounds

    # Batch tiling: pad B up to a multiple of the tile (never a bt=B fallback) and
    # keep grid >= 2 where possible so the "parallel" axis feeds both v7x cores.
    B_pad = _round_up(B, 8)
    bt = min(_round_up(b_tile, 8), B_pad)
    if B_pad // bt < 2 and B_pad >= 16:
        bt = _round_up(B_pad // 2, 8)
    B_pad = _round_up(B_pad, bt)

    # Only XLA-side prep left: pad the tiny int32 index array.  Padded batch rows /
    # time-tail positions use index 0; their contributions never reach an unmasked output.
    idx = jnp.zeros((B_pad, L_pad), jnp.int32).at[:B, :L].set(text_indices.astype(jnp.int32))

    kernel = functools.partial(textcnn_kernel, K=K, L_out=L_out,
                               L_out_pad=L_out_pad, KE_pad=KE_pad)
    logits_pad = pl.pallas_call(
        kernel,
        out_shape=jax.ShapeDtypeStruct((B_pad, NC_pad), jnp.float32),
        grid_spec=pl.GridSpec(
            grid=(B_pad // bt,),
            in_specs=[
                pl.BlockSpec((bt, L_pad), lambda i: (i, 0)),        # indices (only per-step DMA)
                pl.BlockSpec((V_pad, E), lambda i: (0, 0)),         # embedding table (resident)
                pl.BlockSpec((KE_pad, C_pad), lambda i: (0, 0)),    # im2col conv weight
                pl.BlockSpec((1, C_pad), lambda i: (0, 0)),         # conv bias
                pl.BlockSpec((C_pad, NC_pad), lambda i: (0, 0)),    # fc weight (f32)
                pl.BlockSpec((1, NC_pad), lambda i: (0, 0)),        # fc bias
            ],
            out_specs=pl.BlockSpec((bt, NC_pad), lambda i: (i, 0)), # lane-dense output store
        ),
        compiler_params=pltpu.CompilerParams(
            dimension_semantics=("parallel",),
            vmem_limit_bytes=32 * 1024 * 1024,   # safe on v7x (64 MiB phys) and v5e/v6e
        ),
    )(idx, emb_table, conv_w, conv_b, fc_w, fc_b)
    return logits_pad[:B, :num_classes]


def forward_ref(text_indices, emb_table, conv_w, conv_b, fc_w, fc_b):
    """Pure-JAX f32 reference mirroring the PyTorch module (NCL conv)."""
    embedded = emb_table[text_indices]                    # (B, L, E)
    x = jnp.transpose(embedded, (0, 2, 1))                # (B, E, L)
    conved = jax.lax.conv_general_dilated(
        x, conv_w, window_strides=(1,), padding="VALID",
        dimension_numbers=("NCH", "OIH", "NCH"))          # (B, C, L-K+1)
    activated = jax.nn.relu(conved + conv_b[None, :, None])
    pooled = jnp.max(activated, axis=2)                   # (B, C)
    return pooled @ fc_w.T + fc_b                         # (B, NC)


if __name__ == "__main__":
    vocab_size, embed_dim, num_classes = 100, 32, 4
    out_channels, kernel_size, padding_idx = 50, 3, 0
    batch, seq_len = 32, 16                               # -> bt=16, grid=(2,) parallel

    key = jax.random.PRNGKey(0)
    k_emb, k_cw, k_cb, k_fw, k_fb, k_idx = jax.random.split(key, 6)

    emb_table = 0.1 * jax.random.normal(k_emb, (vocab_size, embed_dim), jnp.float32)
    emb_table = emb_table.at[padding_idx].set(0.0)        # padding_idx row is zero
    conv_w = 0.1 * jax.random.normal(k_cw, (out_channels, embed_dim, kernel_size), jnp.float32)
    conv_b = 0.1 * jax.random.normal(k_cb, (out_channels,), jnp.float32)
    fc_w = 0.1 * jax.random.normal(k_fw, (num_classes, out_channels), jnp.float32)
    fc_b = 0.1 * jax.random.normal(k_fb, (num_classes,), jnp.float32)

    text_indices = jax.random.randint(k_idx, (batch, seq_len), 0, vocab_size, jnp.int32)

    params = prepare_params(emb_table, conv_w, conv_b, fc_w, fc_b)   # one-time re-layout
    logits = textcnn_forward(
        text_indices, params["emb_table"], params["conv_w"], params["conv_b"],
        params["fc_w"], params["fc_b"],
        kernel_size=params["kernel_size"], num_classes=params["num_classes"])
    logits = jax.block_until_ready(logits)

    ref = forward_ref(text_indices, emb_table, conv_w, conv_b, fc_w, fc_b)
    np.testing.assert_allclose(np.asarray(logits), np.asarray(ref), rtol=2e-2, atol=2e-2)

    print("KERNEL_OK")
</pallas_src>

<mosaic_0001>
module attributes {stable_mosaic.version = 11 : i64} {
  func.func @textcnn_kernel(%arg0: i32, %arg1: memref<16x32xi32, #tpu.memory_space<vmem>>, %arg2: memref<128x32xbf16, #tpu.memory_space<vmem>>, %arg3: memref<128x128xbf16, #tpu.memory_space<vmem>>, %arg4: memref<1x128xf32, #tpu.memory_space<vmem>>, %arg5: memref<128x128xf32, #tpu.memory_space<vmem>>, %arg6: memref<1x128xf32, #tpu.memory_space<vmem>>, %arg7: memref<16x128xf32, #tpu.memory_space<vmem>>) attributes {dimension_semantics = [#tpu.dimension_semantics<parallel>], iteration_bounds = array<i64: 2>, scalar_prefetch = 0 : i64, scratch_operands = 0 : i64, tpu.core_type = #tpu.core_type<tc>, window_params = [{transform_indices = @transform_0, window_bounds = array<i64: 16, 32>}, {pipeline_mode = #tpu.pipeline_mode<synchronous>, transform_indices = @transform_1, window_bounds = array<i64: 128, 32>}, {pipeline_mode = #tpu.pipeline_mode<synchronous>, transform_indices = @transform_2, window_bounds = array<i64: 128, 128>}, {pipeline_mode = #tpu.pipeline_mode<synchronous>, transform_indices = @transform_3, window_bounds = array<i64: 1, 128>}, {pipeline_mode = #tpu.pipeline_mode<synchronous>, transform_indices = @transform_4, window_bounds = array<i64: 128, 128>}, {pipeline_mode = #tpu.pipeline_mode<synchronous>, transform_indices = @transform_5, window_bounds = array<i64: 1, 128>}, {transform_indices = @transform_6, window_bounds = array<i64: 16, 128>}]} {
    %c0 = arith.constant 0 : index
    %c0_0 = arith.constant 0 : index
    %0 = vector.load %arg1[%c0, %c0_0] : memref<16x32xi32, #tpu.memory_space<vmem>>, vector<16x32xi32>
    %1 = tpu.iota {dimensions = array<i32: 2>} : vector<16x32x128xi32>
    %2 = vector.shape_cast %0 : vector<16x32xi32> to vector<16x32x1xi32>
    %3 = vector.broadcast %2 : vector<16x32x1xi32> to vector<16x32x128xi32>
    %4 = arith.cmpi eq, %3, %1 : vector<16x32x128xi32>
    %5 = arith.extui %4 : vector<16x32x128xi1> to vector<16x32x128xi32>
    %6 = arith.sitofp %5 : vector<16x32x128xi32> to vector<16x32x128xf32>
    %7 = arith.truncf %6 : vector<16x32x128xf32> to vector<16x32x128xbf16>
    %8 = vector.shape_cast %7 : vector<16x32x128xbf16> to vector<512x128xbf16>
    %c0_1 = arith.constant 0 : index
    %c0_2 = arith.constant 0 : index
    %9 = vector.load %arg2[%c0_1, %c0_2] : memref<128x32xbf16, #tpu.memory_space<vmem>>, vector<128x32xbf16>
    %cst = arith.constant dense<0.000000e+00> : vector<512x32xf32>
    %10 = tpu.matmul %8, %9, %cst {dimension_numbers = #tpu.dot_dimension_numbers<[1], [0], [0], [1], [0, 0, 1, 1], [], []>} : vector<512x128xbf16>, vector<128x32xbf16>, vector<512x32xf32> -> vector<512x32xf32>
    %11 = arith.truncf %10 : vector<512x32xf32> to vector<512x32xbf16>
    %12 = vector.shape_cast %11 : vector<512x32xbf16> to vector<16x32x32xbf16>
    %13 = vector.extract_strided_slice %12 {offsets = [0, 0, 0], sizes = [16, 16, 32], strides = [1, 1, 1]} : vector<16x32x32xbf16> to vector<16x16x32xbf16>
    %14 = vector.extract_strided_slice %12 {offsets = [0, 1, 0], sizes = [16, 16, 32], strides = [1, 1, 1]} : vector<16x32x32xbf16> to vector<16x16x32xbf16>
    %15 = vector.extract_strided_slice %12 {offsets = [0, 2, 0], sizes = [16, 16, 32], strides = [1, 1, 1]} : vector<16x32x32xbf16> to vector<16x16x32xbf16>
    %cst_3 = arith.constant 0.000000e+00 : bf16
    %16 = vector.broadcast %cst_3 : bf16 to vector<16x16x32xbf16>
    %17 = tpu.concatenate %13, %14, %15, %16 in 2 : vector<16x16x32xbf16>, vector<16x16x32xbf16>, vector<16x16x32xbf16>, vector<16x16x32xbf16> -> vector<16x16x128xbf16>
    %18 = vector.shape_cast %17 : vector<16x16x128xbf16> to vector<256x128xbf16>
    %c0_4 = arith.constant 0 : index
    %c0_5 = arith.constant 0 : index
    %19 = vector.load %arg3[%c0_4, %c0_5] : memref<128x128xbf16, #tpu.memory_space<vmem>>, vector<128x128xbf16>
    %cst_6 = arith.constant dense<0.000000e+00> : vector<256x128xf32>
    %20 = tpu.matmul %18, %19, %cst_6 {dimension_numbers = #tpu.dot_dimension_numbers<[1], [0], [0], [1], [0, 0, 1, 1], [], []>} : vector<256x128xbf16>, vector<128x128xbf16>, vector<256x128xf32> -> vector<256x128xf32>
    %21 = vector.shape_cast %20 : vector<256x128xf32> to vector<16x16x128xf32>
    %22 = tpu.iota {dimensions = array<i32: 1>} : vector<1x16x1xi32>
    %c14_i32 = arith.constant 14 : i32
    %23 = vector.broadcast %c14_i32 : i32 to vector<1x16x1xi32>
    %24 = arith.cmpi slt, %22, %23 : vector<1x16x1xi32>
    %cst_7 = arith.constant 0.000000e+00 : f32
    %cst_8 = arith.constant -1.000000e+30 : f32
    %25 = vector.broadcast %cst_7 : f32 to vector<1x16x1xf32>
    %26 = vector.broadcast %cst_8 : f32 to vector<1x16x1xf32>
    %27 = arith.select %24, %25, %26 : vector<1x16x1xi1>, vector<1x16x1xf32>
    %28 = vector.broadcast %27 : vector<1x16x1xf32> to vector<16x16x128xf32>
    %29 = arith.addf %21, %28 : vector<16x16x128xf32>
    %cst_9 = arith.constant dense<0xFF800000> : vector<16x128xf32>
    %30 = vector.multi_reduction <maximumf>, %29, %cst_9 [1] : vector<16x16x128xf32> to vector<16x128xf32>
    %c0_10 = arith.constant 0 : index
    %c0_11 = arith.constant 0 : index
    %31 = vector.load %arg4[%c0_10, %c0_11] : memref<1x128xf32, #tpu.memory_space<vmem>>, vector<1x128xf32>
    %32 = vector.broadcast %31 : vector<1x128xf32> to vector<16x128xf32>
    %33 = arith.addf %30, %32 : vector<16x128xf32>
    %cst_12 = arith.constant 0.000000e+00 : f32
    %34 = vector.broadcast %cst_12 : f32 to vector<16x128xf32>
    %35 = arith.maximumf %33, %34 : vector<16x128xf32>
    %c0_13 = arith.constant 0 : index
    %c0_14 = arith.constant 0 : index
    %36 = vector.load %arg5[%c0_13, %c0_14] : memref<128x128xf32, #tpu.memory_space<vmem>>, vector<128x128xf32>
    %cst_15 = arith.constant dense<0.000000e+00> : vector<16x128xf32>
    %37 = tpu.matmul %35, %36, %cst_15 {dimension_numbers = #tpu.dot_dimension_numbers<[1], [0], [0], [1], [0, 0, 1, 1], [], []>} : vector<16x128xf32>, vector<128x128xf32>, vector<16x128xf32> -> vector<16x128xf32>
    %c0_16 = arith.constant 0 : index
    %c0_17 = arith.constant 0 : index
    %38 = vector.load %arg6[%c0_16, %c0_17] : memref<1x128xf32, #tpu.memory_space<vmem>>, vector<1x128xf32>
    %39 = vector.broadcast %38 : vector<1x128xf32> to vector<16x128xf32>
    %40 = arith.addf %37, %39 : vector<16x128xf32>
    %c0_18 = arith.constant 0 : index
    %c0_19 = arith.constant 0 : index
    %41 = vector.load %arg7[%c0_18, %c0_19] : memref<16x128xf32, #tpu.memory_space<vmem>>, vector<16x128xf32>
    tpu.vector_store %arg7[%c0_18, %c0_19], %40 {strides = array<i32>} : memref<16x128xf32, #tpu.memory_space<vmem>>, vector<16x128xf32>,
    return
  }
  func.func @transform_0(%arg0: i32) -> (i32, i32) {
    %c0_i32 = arith.constant 0 : i32
    %c0_i32_0 = arith.constant 0 : i32
    return %arg0, %c0_i32 : i32, i32
  }
  func.func @transform_1(%arg0: i32) -> (i32, i32) {
    %c0_i32 = arith.constant 0 : i32
    %c0_i32_0 = arith.constant 0 : i32
    %c0_i32_1 = arith.constant 0 : i32
    return %c0_i32, %c0_i32_0 : i32, i32
  }
  func.func @transform_2(%arg0: i32) -> (i32, i32) {
    %c0_i32 = arith.constant 0 : i32
    %c0_i32_0 = arith.constant 0 : i32
    %c0_i32_1 = arith.constant 0 : i32
    return %c0_i32, %c0_i32_0 : i32, i32
  }
  func.func @transform_3(%arg0: i32) -> (i32, i32) {
    %c0_i32 = arith.constant 0 : i32
    %c0_i32_0 = arith.constant 0 : i32
    %c0_i32_1 = arith.constant 0 : i32
    return %c0_i32, %c0_i32_0 : i32, i32
  }
  func.func @transform_4(%arg0: i32) -> (i32, i32) {
    %c0_i32 = arith.constant 0 : i32
    %c0_i32_0 = arith.constant 0 : i32
    %c0_i32_1 = arith.constant 0 : i32
    return %c0_i32, %c0_i32_0 : i32, i32
  }
  func.func @transform_5(%arg0: i32) -> (i32, i32) {
    %c0_i32 = arith.constant 0 : i32
    %c0_i32_0 = arith.constant 0 : i32
    %c0_i32_1 = arith.constant 0 : i32
    return %c0_i32, %c0_i32_0 : i32, i32
  }
  func.func @transform_6(%arg0: i32) -> (i32, i32) {
    %c0_i32 = arith.constant 0 : i32
    %c0_i32_0 = arith.constant 0 : i32
    return %arg0, %c0_i32 : i32, i32
  }
}

</mosaic_0001>

<bundles_post_ra>
// kernel: textcnn_forward.1
= control target key start
LH: loop header
LB: loop body
LE: loop exit
PB: predicated region body
PF: predicated region fallthrough
CT: control target
= control target key end

     0   :  { %s2760_s21 = smov 0   ;;  %s3307_s0 = inlined_call_operand.vmem [shape: s32[32,32], index: 0, kind: input, shape index: {}]   ;;  %s3308_s1 = inlined_call_operand.vmem [shape: bf16[128,32], index: 1, kind: input, shape index: {}]   ;;  %s3309_s2 = inlined_call_operand.vmem [shape: bf16[128,128], index: 2, kind: input, shape index: {}]   ;;  %s3310_s3 = inlined_call_operand.vmem [shape: f32[1,128], index: 3, kind: input, shape index: {}]   ;;  %s3311_s4 = inlined_call_operand.vmem [shape: f32[128,128], index: 4, kind: input, shape index: {}]   ;;  %s3312_s5 = inlined_call_operand.vmem [shape: f32[1,128], index: 5, kind: input, shape index: {}]   ;;  %s3313_s6 = inlined_call_operand.vmem [shape: f32[32,128], index: 6, kind: output, shape index: {}]  }
   0x1 LB: > { %s2235_s22 = sadd.s32 4294967295, %s2719_s21   ;;  %p2239_p0 = scmp.ge.s32.totalorder %s2719_s21, 1  ;;  %s2719_s21 = sphi %s2760_s21, %s16_s21  }
   0x2   : > { %p213_p1 = scmp.lt.s32.totalorder %s2719_s21, 3 }
   0x4   : > { %p214_p2 = pnand %p2239_p0, %p213_p1 }
   0x5   : > { %s2240_s23 = sshll.u32 (!%p214_p2), %s2235_s22, 1  ;;  %v258_v0 = vlaneseq (!%p214_p2)  ;;  %v2697_v1 = vld [vmem:[%s3308_s1] sm:$0xff] (!%p214_p2)   ;;  %v2698_v2 = vld [vmem:[%s3308_s1 + $0x8] sm:$0xff] (!%p214_p2)   ;;  %v2699_v5 = vld [vmem:[%s3308_s1 + $0x10] sm:$0xff] (!%p214_p2)   ;;  %v2721_v41 = vmov (!%p214_p2), 1.0|1.0  }
   0x6   : > { %217 = sbr.rel (%p214_p2) target bundleno = 1061 (0x425), region = 44  ;;  %p244_p3 = scmp.lt.s32.totalorder (!%p214_p2), %s2240_s23, 3  ;;  %2490 = vmatprep.subr.bf16.mxu0 (!%p214_p2), %v2697_v1  ;;  %v2700_v7 = vld [vmem:[%s3308_s1 + $0x18] sm:$0xff] (!%p214_p2)   ;;  %v2701_v20 = vld [vmem:[%s3308_s1 + $0x20] sm:$0xff] (!%p214_p2)   ;;  %v2702_v27 = vld [vmem:[%s3308_s1 + $0x28] sm:$0xff] (!%p214_p2)  }
   0x7   : > { %v2775_v3 = vshrl.u32 (!%p214_p2), %v258_v0, 7  ;;  %2491 = vmatpush3.bf16.msra.mxu0 (!%p214_p2), %v2697_v1  ;;  %v2703_v28 = vld [vmem:[%s3308_s1 + $0x30] sm:$0xff] (!%p214_p2)   ;;  %v2704_v30 = vld [vmem:[%s3308_s1 + $0x38] sm:$0xff] (!%p214_p2)   ;;  %v2858_v38 = vand.u32 (!%p214_p2), 127, %v258_v0  ;;  %s2722_s15 = smov (!%p214_p2), 32   ;;  %s2723_s16 = smov (!%p214_p2), 64  }
   0x8   : > { %2492 = vmatprep.subr.bf16.mxu0 (!%p214_p2), %v2698_v2 }
   0x9   : > { %v262_v4 = vsub.s32 (!%p214_p2), 0, %v2775_v3  ;;  %v281_v6 = vsub.s32 (!%p214_p2), 1, %v2775_v3  ;;  %v300_v9 = vsub.s32 (!%p214_p2), 2, %v2775_v3  ;;  %v319_v10 = vsub.s32 (!%p214_p2), 3, %v2775_v3 }
   0xa   : > { %v338_v13 = vsub.s32 (!%p214_p2), 4, %v2775_v3  ;;  %v357_v14 = vsub.s32 (!%p214_p2), 5, %v2775_v3  ;;  %v376_v15 = vsub.s32 (!%p214_p2), 6, %v2775_v3  ;;  %v395_v16 = vsub.s32 (!%p214_p2), 7, %v2775_v3 }
   0xb   : > { %2493 = vmatpush3.bf16.msra.mxu0 (!%p214_p2), %v2698_v2 }
   0xc   : > { %2494 = vmatprep.subr.bf16.mxu0 (!%p214_p2), %v2699_v5 }
   0xd   : > { %s3315_s23 = smov (!%p244_p3, %s2240_s23), 3 }
   0xe   : > { %s2241_s30 = sshll.u32 %s3315_s23, 3 }
   0xf   : > { %s247_s9 = scalar_lea.vmem %s3307_s0, %s2241_s30  ;;  %2495 = vmatpush3.bf16.msra.mxu0 %v2699_v5  ;;  %s253_s13 = scalar_lea.vmem %s3313_s6, %s2241_s30 }
  0x10   : > { %v2793_v8 = vld [vmem:[%s247_s9] sm:$0xff]  ;;  %v257_v11 = vld [vmem:[%s247_s9 + $0x8] sm:$0xff]  ;;  %2496 = vmatprep.subr.bf16.mxu0 %v2700_v7 }
  0x11   : > { %v263_v12 = vrot.slane %v2793_v8, %v262_v4  ;;  %v415_v17 = vrot.slane %v257_v11, %v262_v4  ;;  %v2802_v18 = vrot.slane %v257_v11, %v281_v6  ;;  %v2804_v19 = vrot.slane %v257_v11, %v300_v9 }
  0x12   : > { %v2809_v21 = vrot.slane %v257_v11, %v319_v10  ;;  %v2811_v22 = vrot.slane %v257_v11, %v338_v13  ;;  %v2813_v23 = vrot.slane %v257_v11, %v357_v14  ;;  %v2815_v24 = vrot.slane %v257_v11, %v376_v15 }
  0x13   : > { %273 = vbcast.lane.b32.xlu1 %v263_v12, 272  ;;  %265 = vbcast.lane.b32.xlu0 %v263_v12, 256  ;;  %v2817_v25 = vrot.slane %v257_v11, %v395_v16  ;;  %v282_v26 = vrot.slane %v2793_v8, %v281_v6  ;;  %v301_v29 = vrot.slane %v2793_v8, %v300_v9 }
  0x14   : > { %2497 = vmatpush3.bf16.msra.mxu0 %v2700_v7  ;;  %v320_v31 = vrot.slane %v2793_v8, %v319_v10  ;;  %v339_v32 = vrot.slane %v2793_v8, %v338_v13  ;;  %v358_v33 = vrot.slane %v2793_v8, %v357_v14  ;;  %v377_v34 = vrot.slane %v2793_v8, %v376_v15 }
  0x15   : > { %2498 = vmatprep.subr.bf16.mxu0 %v2701_v20  ;;  %v396_v35 = vrot.slane %v2793_v8, %v395_v16 }
  0x17   : > { %277 = vbcast.lane.b32.xlu1 %v263_v12, 280  ;;  %269 = vbcast.lane.b32.xlu0 %v263_v12, 264 }
  0x18   : > { %2499 = vmatpush3.bf16.msra.mxu0 %v2701_v20 }
  0x19   : > { %2500 = vmatprep.subr.bf16.mxu0 %v2702_v27 }
  0x1b   : > { %288 = vbcast.lane.b32.xlu1 %v282_v26, 264  ;;  %284 = vbcast.lane.b32.xlu0 %v282_v26, 256 }
  0x1c   : > { %2501 = vmatpush3.bf16.msra.mxu0 %v2702_v27 }
  0x1d   : > { %2502 = vmatprep.subr.bf16.mxu0 %v2703_v28 }
  0x1f   : > { %296 = vbcast.lane.b32.xlu1 %v282_v26, 280  ;;  %292 = vbcast.lane.b32.xlu0 %v282_v26, 272 }
  0x20   : > { %2503 = vmatpush3.bf16.msra.mxu0 %v2703_v28 }
  0x21   : > { %2504 = vmatprep.subr.bf16.mxu0 %v2704_v30 }
  0x23   : > { %307 = vbcast.lane.b32.xlu1 %v301_v29, 264  ;;  %303 = vbcast.lane.b32.xlu0 %v301_v29, 256 }
  0x24   : > { %2505 = vmatpush3.bf16.msra.mxu0 %v2704_v30 }
  0x27   : > { %315 = vbcast.lane.b32.xlu1 %v301_v29, 280  ;;  %311 = vbcast.lane.b32.xlu0 %v301_v29, 272 }
  0x2b   : > { %326 = vbcast.lane.b32.xlu1 %v320_v31, 264  ;;  %322 = vbcast.lane.b32.xlu0 %v320_v31, 256 }
  0x2f   : > { %334 = vbcast.lane.b32.xlu1 %v320_v31, 280  ;;  %330 = vbcast.lane.b32.xlu0 %v320_v31, 272 }
  0x33   : > { %345 = vbcast.lane.b32.xlu1 %v339_v32, 264  ;;  %341 = vbcast.lane.b32.xlu0 %v339_v32, 256 }
  0x37   : > { %353 = vbcast.lane.b32.xlu1 %v339_v32, 280  ;;  %349 = vbcast.lane.b32.xlu0 %v339_v32, 272 }
  0x3b   : > { %364 = vbcast.lane.b32.xlu1 %v358_v33, 264  ;;  %360 = vbcast.lane.b32.xlu0 %v358_v33, 256 }
  0x3f   : > { %372 = vbcast.lane.b32.xlu1 %v358_v33, 280  ;;  %368 = vbcast.lane.b32.xlu0 %v358_v33, 272 }
  0x43   : > { %383 = vbcast.lane.b32.xlu1 %v377_v34, 264  ;;  %379 = vbcast.lane.b32.xlu0 %v377_v34, 256 }
  0x47   : > { %391 = vbcast.lane.b32.xlu1 %v377_v34, 280  ;;  %387 = vbcast.lane.b32.xlu0 %v377_v34, 272 }
  0x4b   : > { %402 = vbcast.lane.b32.xlu1 %v396_v35, 264  ;;  %398 = vbcast.lane.b32.xlu0 %v396_v35, 256 }
  0x4f   : > { %410 = vbcast.lane.b32.xlu1 %v396_v35, 280  ;;  %406 = vbcast.lane.b32.xlu0 %v396_v35, 272 }
  0x53   : > { %421 = vbcast.lane.b32.xlu1 %v415_v17, 264  ;;  %417 = vbcast.lane.b32.xlu0 %v415_v17, 256 }
  0x57   : > { %429 = vbcast.lane.b32.xlu1 %v415_v17, 280  ;;  %425 = vbcast.lane.b32.xlu0 %v415_v17, 272 }
  0x5b   : > { %440 = vbcast.lane.b32.xlu1 %v2802_v18, 264  ;;  %436 = vbcast.lane.b32.xlu0 %v2802_v18, 256 }
  0x5f   : > { %448 = vbcast.lane.b32.xlu1 %v2802_v18, 280  ;;  %444 = vbcast.lane.b32.xlu0 %v2802_v18, 272 }
  0x63   : > { %459 = vbcast.lane.b32.xlu1 %v2804_v19, 264  ;;  %455 = vbcast.lane.b32.xlu0 %v2804_v19, 256 }
  0x67   : > { %467 = vbcast.lane.b32.xlu1 %v2804_v19, 280  ;;  %463 = vbcast.lane.b32.xlu0 %v2804_v19, 272 }
  0x6b   : > { %478 = vbcast.lane.b32.xlu1 %v2809_v21, 264  ;;  %474 = vbcast.lane.b32.xlu0 %v2809_v21, 256 }
  0x6f   : > { %486 = vbcast.lane.b32.xlu1 %v2809_v21, 280  ;;  %482 = vbcast.lane.b32.xlu0 %v2809_v21, 272 }
  0x73   : > { %497 = vbcast.lane.b32.xlu1 %v2811_v22, 264  ;;  %493 = vbcast.lane.b32.xlu0 %v2811_v22, 256 }
  0x77   : > { %505 = vbcast.lane.b32.xlu1 %v2811_v22, 280  ;;  %501 = vbcast.lane.b32.xlu0 %v2811_v22, 272 }
  0x7b   : > { %516 = vbcast.lane.b32.xlu1 %v2813_v23, 264  ;;  %512 = vbcast.lane.b32.xlu0 %v2813_v23, 256 }
  0x7f   : > { %524 = vbcast.lane.b32.xlu1 %v2813_v23, 280  ;;  %520 = vbcast.lane.b32.xlu0 %v2813_v23, 272 }
  0x83   : > { %535 = vbcast.lane.b32.xlu1 %v2815_v24, 264  ;;  %531 = vbcast.lane.b32.xlu0 %v2815_v24, 256 }
  0x85   : > { %v274_v36 = vpop.permute.xlu1 %273  ;;  %v266_v37 = vpop.permute.xlu0 %265 }
  0x86   : > { %vm566_vm0 = vcmp.eq.s32.totalorder %v274_v36, %v2858_v38  ;;  %vm564_vm3 = vcmp.eq.s32.totalorder %v266_v37, %v2858_v38 }
  0x87   : > { %543 = vbcast.lane.b32.xlu1 %v2815_v24, 280  ;;  %539 = vbcast.lane.b32.xlu0 %v2815_v24, 272 }
  0x89   : > { %v278_v39 = vpop.permute.xlu1 %277  ;;  %v270_v40 = vpop.permute.xlu0 %269 }
  0x8a   : > { %vm567_vm1 = vcmp.eq.s32.totalorder %v278_v39, %v2858_v38  ;;  %vm565_vm2 = vcmp.eq.s32.totalorder %v270_v40, %v2858_v38  ;;  %v2705_v40 = vld [vmem:[%s3309_s2] sm:$0xff]  }
  0x8b   : > { %vm2318_vm4 = vmpackc.low %vm567_vm1, %vm566_vm0  ;;  %554 = vbcast.lane.b32.xlu1 %v2817_v25, 264  ;;  %550 = vbcast.lane.b32.xlu0 %v2817_v25, 256 }
  0x8c   : > { %vm2316_vm5 = vmpackc.low %vm565_vm2, %vm564_vm3  ;;  %2570 = vmatprep.subr.bf16.mxu1 %v2705_v40 }
  0x8d   : > { %2506 = vmatprep.mubr.msk.bf16.mxu0 %vm2316_vm5, %v2721_v41  ;;  %v289_v42 = vpop.permute.xlu1 %288  ;;  %v285_v43 = vpop.permute.xlu0 %284  ;;  %2571 = vmatpush3.bf16.msra.mxu1 %v2705_v40 }
  0x8e   : > { %2507 = vmatmul.mubr.msk.bf16.vlgmr.msra.gmra.mrb[0].mxu0 %vm2318_vm4, %v2721_v41  ;;  %vm569_vm6 = vcmp.eq.s32.totalorder %v289_v42, %v2858_v38  ;;  %vm568_vm7 = vcmp.eq.s32.totalorder %v285_v43, %v2858_v38  ;;  %v2706_v42 = vld [vmem:[%s3309_s2 + $0x8] sm:$0xff]   ;;  %v2707_v43 = vld [vmem:[%s3309_s2 + $0x10] sm:$0xff]  }
  0x8f   : > { %vm2320_vm8 = vmpackc.low %vm569_vm6, %vm568_vm7  ;;  %562 = vbcast.lane.b32.xlu1 %v2817_v25, 280  ;;  %558 = vbcast.lane.b32.xlu0 %v2817_v25, 272 }
  0x90   : > { %2510 = vmatprep.mubr.msk.bf16.mxu0 %vm2320_vm8, %v2721_v41  ;;  %2572 = vmatprep.subr.bf16.mxu1 %v2706_v42 }
  0x91   : > { %v297_v44 = vpop.permute.xlu1 %296  ;;  %v293_v45 = vpop.permute.xlu0 %292  ;;  %2573 = vmatpush3.bf16.msra.mxu1 %v2706_v42 }
  0x92   : > { %vm571_vm9 = vcmp.eq.s32.totalorder %v297_v44, %v2858_v38  ;;  %vm570_vm10 = vcmp.eq.s32.totalorder %v293_v45, %v2858_v38  ;;  %2574 = vmatprep.subr.bf16.mxu1 %v2707_v43  ;;  %v2710_v44 = vld [vmem:[%s3309_s2 + $0x28] sm:$0xff]  }
  0x93   : > { %vm2322_vm11 = vmpackc.low %vm571_vm9, %vm570_vm10 }
  0x95   : > { %v308_v46 = vpop.permute.xlu1 %307  ;;  %v304_v47 = vpop.permute.xlu0 %303  ;;  %2575 = vmatpush3.bf16.msra.mxu1 %v2707_v43 }
  0x96   : > { %2511 = vmatmul.mubr.msk.bf16.gmra.mrb[4].mxu0 %vm2322_vm11, %v2721_v41  ;;  %vm573_vm12 = vcmp.eq.s32.totalorder %v308_v46, %v2858_v38  ;;  %vm572_vm13 = vcmp.eq.s32.totalorder %v304_v47, %v2858_v38 }
  0x97   : > { %vm2324_vm14 = vmpackc.low %vm573_vm12, %vm572_vm13 }
  0x98   : > { %2514 = vmatprep.mubr.msk.bf16.mxu0 %vm2324_vm14, %v2721_v41 }
  0x99   : > { %v316_v48 = vpop.permute.xlu1 %315  ;;  %v312_v49 = vpop.permute.xlu0 %311 }
  0x9a   : > { %vm575_vm15 = vcmp.eq.s32.totalorder %v316_v48, %v2858_v38  ;;  %vm574_vm0 = vcmp.eq.s32.totalorder %v312_v49, %v2858_v38 }
  0x9b   : > { %vm2326_vm1 = vmpackc.low %vm575_vm15, %vm574_vm0 }
  0x9d   : > { %v327_v50 = vpop.permute.xlu1 %326  ;;  %v323_v51 = vpop.permute.xlu0 %322 }
  0x9e   : > { %2515 = vmatmul.mubr.msk.bf16.gmra.mrb[8].mxu0 %vm2326_vm1, %v2721_v41  ;;  %vm577_vm2 = vcmp.eq.s32.totalorder %v327_v50, %v2858_v38  ;;  %vm576_vm3 = vcmp.eq.s32.totalorder %v323_v51, %v2858_v38  ;;  %v2711_v50 = vld [vmem:[%s3309_s2 + $0x30] sm:$0xff]  }
  0x9f   : > { %vm2328_vm4 = vmpackc.low %vm577_vm2, %vm576_vm3 }
  0xa0   : > { %2518 = vmatprep.mubr.msk.bf16.mxu0 %vm2328_vm4, %v2721_v41 }
  0xa1   : > { %v335_v52 = vpop.permute.xlu1 %334  ;;  %v331_v53 = vpop.permute.xlu0 %330 }
  0xa2   : > { %vm579_vm5 = vcmp.eq.s32.totalorder %v335_v52, %v2858_v38  ;;  %vm578_vm6 = vcmp.eq.s32.totalorder %v331_v53, %v2858_v38 }
  0xa3   : > { %vm2330_vm7 = vmpackc.low %vm579_vm5, %vm578_vm6 }
  0xa5   : > { %v346_v54 = vpop.permute.xlu1 %345  ;;  %v342_v55 = vpop.permute.xlu0 %341 }
  0xa6   : > { %2519 = vmatmul.mubr.msk.bf16.gmra.mrb[12].mxu0 %vm2330_vm7, %v2721_v41  ;;  %vm581_vm8 = vcmp.eq.s32.totalorder %v346_v54, %v2858_v38  ;;  %vm580_vm9 = vcmp.eq.s32.totalorder %v342_v55, %v2858_v38  ;;  %v2712_v54 = vld [vmem:[%s3309_s2 + $0x38] sm:$0xff]  }
  0xa7   : > { %vm2332_vm10 = vmpackc.low %vm581_vm8, %vm580_vm9 }
  0xa8   : > { %2522 = vmatprep.mubr.msk.bf16.mxu0 %vm2332_vm10, %v2721_v41 }
  0xa9   : > { %v354_v56 = vpop.permute.xlu1 %353  ;;  %v350_v57 = vpop.permute.xlu0 %349 }
  0xaa   : > { %vm583_vm11 = vcmp.eq.s32.totalorder %v354_v56, %v2858_v38  ;;  %vm582_vm12 = vcmp.eq.s32.totalorder %v350_v57, %v2858_v38 }
  0xab   : > { %vm2334_vm13 = vmpackc.low %vm583_vm11, %vm582_vm12 }
  0xad   : > { %v365_v58 = vpop.permute.xlu1 %364  ;;  %v361_v59 = vpop.permute.xlu0 %360 }
  0xae   : > { %2523 = vmatmul.mubr.msk.bf16.gmra.mrb[16].mxu0 %vm2334_vm13, %v2721_v41  ;;  %vm585_vm14 = vcmp.eq.s32.totalorder %v365_v58, %v2858_v38  ;;  %vm584_vm15 = vcmp.eq.s32.totalorder %v361_v59, %v2858_v38 }
  0xaf   : > { %vm2336_vm0 = vmpackc.low %vm585_vm14, %vm584_vm15 }
  0xb0   : > { %2526 = vmatprep.mubr.msk.bf16.mxu0 %vm2336_vm0, %v2721_v41 }
  0xb1   : > { %v373_v60 = vpop.permute.xlu1 %372  ;;  %v369_v61 = vpop.permute.xlu0 %368 }
  0xb2   : > { %vm587_vm1 = vcmp.eq.s32.totalorder %v373_v60, %v2858_v38  ;;  %vm586_vm2 = vcmp.eq.s32.totalorder %v369_v61, %v2858_v38 }
  0xb3   : > { %vm2338_vm3 = vmpackc.low %vm587_vm1, %vm586_vm2 }
  0xb5   : > { %v384_v62 = vpop.permute.xlu1 %383  ;;  %v380_v63 = vpop.permute.xlu0 %379 }
  0xb6   : > { %2527 = vmatmul.mubr.msk.bf16.gmra.mrb[20].mxu0 %vm2338_vm3, %v2721_v41  ;;  %vm589_vm4 = vcmp.eq.s32.totalorder %v384_v62, %v2858_v38  ;;  %vm588_vm5 = vcmp.eq.s32.totalorder %v380_v63, %v2858_v38 }
  0xb7   : > { %vm2340_vm6 = vmpackc.low %vm589_vm4, %vm588_vm5 }
  0xb8   : > { %2530 = vmatprep.mubr.msk.bf16.mxu0 %vm2340_vm6, %v2721_v41 }
  0xb9   : > { %v392_v0 = vpop.permute.xlu1 %391  ;;  %v388_v1 = vpop.permute.xlu0 %387 }
  0xba   : > { %vm591_vm7 = vcmp.eq.s32.totalorder %v392_v0, %v2858_v38  ;;  %vm590_vm8 = vcmp.eq.s32.totalorder %v388_v1, %v2858_v38 }
  0xbb   : > { %vm2342_vm9 = vmpackc.low %vm591_vm7, %vm590_vm8 }
  0xbd   : > { %v403_v2 = vpop.permute.xlu1 %402  ;;  %v399_v4 = vpop.permute.xlu0 %398 }
  0xbe   : > { %2531 = vmatmul.mubr.msk.bf16.gmra.mrb[24].mxu0 %vm2342_vm9, %v2721_v41  ;;  %vm593_vm10 = vcmp.eq.s32.totalorder %v403_v2, %v2858_v38  ;;  %vm592_vm11 = vcmp.eq.s32.totalorder %v399_v4, %v2858_v38 }
  0xbf   : > { %vm2344_vm12 = vmpackc.low %vm593_vm10, %vm592_vm11 }
  0xc0   : > { %2534 = vmatprep.mubr.msk.bf16.mxu0 %vm2344_vm12, %v2721_v41 }
  0xc1   : > { %v411_v5 = vpop.permute.xlu1 %410  ;;  %v407_v6 = vpop.permute.xlu0 %406 }
  0xc2   : > { %vm595_vm13 = vcmp.eq.s32.totalorder %v411_v5, %v2858_v38  ;;  %vm594_vm14 = vcmp.eq.s32.totalorder %v407_v6, %v2858_v38 }
  0xc3   : > { %vm2346_vm15 = vmpackc.low %vm595_vm13, %vm594_vm14 }
  0xc5   : > { %v422_v7 = vpop.permute.xlu1 %421  ;;  %v418_v8 = vpop.permute.xlu0 %417 }
  0xc6   : > { %2535 = vmatmul.mubr.msk.bf16.gmra.mrb[28].mxu0 %vm2346_vm15, %v2721_v41  ;;  %vm597_vm0 = vcmp.eq.s32.totalorder %v422_v7, %v2858_v38  ;;  %vm596_vm1 = vcmp.eq.s32.totalorder %v418_v8, %v2858_v38 }
  0xc7   : > { %vm2348_vm2 = vmpackc.low %vm597_vm0, %vm596_vm1 }
  0xc8   : > { %2538 = vmatprep.mubr.msk.bf16.mxu0 %vm2348_vm2, %v2721_v41 }
  0xc9   : > { %v430_v9 = vpop.permute.xlu1 %429  ;;  %v426_v10 = vpop.permute.xlu0 %425 }
  0xca   : > { %vm599_vm3 = vcmp.eq.s32.totalorder %v430_v9, %v2858_v38  ;;  %vm598_vm4 = vcmp.eq.s32.totalorder %v426_v10, %v2858_v38 }
  0xcb   : > { %vm2350_vm5 = vmpackc.low %vm599_vm3, %vm598_vm4 }
  0xcd   : > { %v441_v11 = vpop.permute.xlu1 %440  ;;  %v437_v12 = vpop.permute.xlu0 %436 }
  0xce   : > { %2539 = vmatmul.mubr.msk.bf16.gmra.mrb[32].mxu0 %vm2350_vm5, %v2721_v41  ;;  %vm601_vm6 = vcmp.eq.s32.totalorder %v441_v11, %v2858_v38  ;;  %vm600_vm7 = vcmp.eq.s32.totalorder %v437_v12, %v2858_v38 }
  0xcf   : > { %vm2352_vm8 = vmpackc.low %vm601_vm6, %vm600_vm7 }
  0xd0   : > { %2542 = vmatprep.mubr.msk.bf16.mxu0 %vm2352_vm8, %v2721_v41 }
  0xd1   : > { %v449_v13 = vpop.permute.xlu1 %448  ;;  %v445_v14 = vpop.permute.xlu0 %444 }
  0xd2   : > { %vm603_vm9 = vcmp.eq.s32.totalorder %v449_v13, %v2858_v38  ;;  %vm602_vm10 = vcmp.eq.s32.totalorder %v445_v14, %v2858_v38 }
  0xd3   : > { %vm2354_vm11 = vmpackc.low %vm603_vm9, %vm602_vm10 }
  0xd5   : > { %v460_v15 = vpop.permute.xlu1 %459  ;;  %v456_v16 = vpop.permute.xlu0 %455 }
  0xd6   : > { %2543 = vmatmul.mubr.msk.bf16.gmra.mrb[36].mxu0 %vm2354_vm11, %v2721_v41  ;;  %vm605_vm12 = vcmp.eq.s32.totalorder %v460_v15, %v2858_v38  ;;  %vm604_vm13 = vcmp.eq.s32.totalorder %v456_v16, %v2858_v38 }
  0xd7   : > { %vm2356_vm14 = vmpackc.low %vm605_vm12, %vm604_vm13 }
  0xd8   : > { %2546 = vmatprep.mubr.msk.bf16.mxu0 %vm2356_vm14, %v2721_v41 }
  0xd9   : > { %v468_v17 = vpop.permute.xlu1 %467  ;;  %v464_v18 = vpop.permute.xlu0 %463 }
  0xda   : > { %vm607_vm15 = vcmp.eq.s32.totalorder %v468_v17, %v2858_v38  ;;  %vm606_vm0 = vcmp.eq.s32.totalorder %v464_v18, %v2858_v38 }
  0xdb   : > { %vm2358_vm1 = vmpackc.low %vm607_vm15, %vm606_vm0 }
  0xdd   : > { %v479_v19 = vpop.permute.xlu1 %478  ;;  %v475_v20 = vpop.permute.xlu0 %474 }
  0xde   : > { %2547 = vmatmul.mubr.msk.bf16.gmra.mrb[40].mxu0 %vm2358_vm1, %v2721_v41  ;;  %vm609_vm2 = vcmp.eq.s32.totalorder %v479_v19, %v2858_v38  ;;  %vm608_vm3 = vcmp.eq.s32.totalorder %v475_v20, %v2858_v38 }
  0xdf   : > { %vm2360_vm4 = vmpackc.low %vm609_vm2, %vm608_vm3 }
  0xe0   : > { %2550 = vmatprep.mubr.msk.bf16.mxu0 %vm2360_vm4, %v2721_v41 }
  0xe1   : > { %v487_v21 = vpop.permute.xlu1 %486  ;;  %v483_v22 = vpop.permute.xlu0 %482 }
  0xe2   : > { %vm611_vm5 = vcmp.eq.s32.totalorder %v487_v21, %v2858_v38  ;;  %vm610_vm6 = vcmp.eq.s32.totalorder %v483_v22, %v2858_v38 }
  0xe3   : > { %vm2362_vm7 = vmpackc.low %vm611_vm5, %vm610_vm6 }
  0xe5   : > { %v498_v23 = vpop.permute.xlu1 %497  ;;  %v494_v24 = vpop.permute.xlu0 %493 }
  0xe6   : > { %2551 = vmatmul.mubr.msk.bf16.gmra.mrb[44].mxu0 %vm2362_vm7, %v2721_v41  ;;  %vm613_vm8 = vcmp.eq.s32.totalorder %v498_v23, %v2858_v38  ;;  %vm612_vm9 = vcmp.eq.s32.totalorder %v494_v24, %v2858_v38 }
  0xe7   : > { %vm2364_vm10 = vmpackc.low %vm613_vm8, %vm612_vm9 }
  0xe8   : > { %2554 = vmatprep.mubr.msk.bf16.mxu0 %vm2364_vm10, %v2721_v41 }
  0xe9   : > { %v506_v25 = vpop.permute.xlu1 %505  ;;  %v502_v26 = vpop.permute.xlu0 %501 }
  0xea   : > { %vm615_vm11 = vcmp.eq.s32.totalorder %v506_v25, %v2858_v38  ;;  %vm614_vm12 = vcmp.eq.s32.totalorder %v502_v26, %v2858_v38 }
  0xeb   : > { %vm2366_vm13 = vmpackc.low %vm615_vm11, %vm614_vm12 }
  0xed   : > { %v517_v27 = vpop.permute.xlu1 %516  ;;  %v513_v28 = vpop.permute.xlu0 %512 }
  0xee   : > { %2555 = vmatmul.mubr.msk.bf16.gmra.mrb[48].mxu0 %vm2366_vm13, %v2721_v41  ;;  %vm617_vm14 = vcmp.eq.s32.totalorder %v517_v27, %v2858_v38  ;;  %vm616_vm15 = vcmp.eq.s32.totalorder %v513_v28, %v2858_v38 }
  0xef   : > { %vm2368_vm0 = vmpackc.low %vm617_vm14, %vm616_vm15 }
  0xf0   : > { %2558 = vmatprep.mubr.msk.bf16.mxu0 %vm2368_vm0, %v2721_v41  ;;  %vm1173_vm0 = vsmask.f32 7424 }
  0xf1   : > { %v525_v29 = vpop.permute.xlu1 %524  ;;  %v521_v30 = vpop.permute.xlu0 %520 }
  0xf2   : > { %vm619_vm1 = vcmp.eq.s32.totalorder %v525_v29, %v2858_v38  ;;  %vm618_vm2 = vcmp.eq.s32.totalorder %v521_v30, %v2858_v38 }
  0xf3   : > { %vm2370_vm3 = vmpackc.low %vm619_vm1, %vm618_vm2  ;;  %vm1430_vm1 = vcmask 1046528   ;;  %vm1511_vm2 = vcmask 261120  }
  0xf5   : > { %v536_v31 = vpop.permute.xlu1 %535  ;;  %v532_v32 = vpop.permute.xlu0 %531 }
  0xf6   : > { %2559 = vmatmul.mubr.msk.bf16.gmra.mrb[52].mxu0 %vm2370_vm3, %v2721_v41  ;;  %vm621_vm4 = vcmp.eq.s32.totalorder %v536_v31, %v2858_v38  ;;  %vm620_vm5 = vcmp.eq.s32.totalorder %v532_v32, %v2858_v38  ;;  %vm1544_vm3 = vcmask 523264  }
  0xf7   : > { %vm2372_vm6 = vmpackc.low %vm621_vm4, %vm620_vm5  ;;  %vm1577_vm4 = vcmask 785408  }
  0xf8   : > { %2562 = vmatprep.mubr.msk.bf16.mxu0 %vm2372_vm6, %v2721_v41  ;;  %vm2066_vm6 = vcmask 1041409  }
  0xf9   : > { %v544_v33 = vpop.permute.xlu1 %543  ;;  %v540_v34 = vpop.permute.xlu0 %539 }
  0xfa   : > { %vm623_vm7 = vcmp.eq.s32.totalorder %v544_v33, %v2858_v38  ;;  %vm622_vm8 = vcmp.eq.s32.totalorder %v540_v34, %v2858_v38 }
  0xfb   : > { %vm2374_vm9 = vmpackc.low %vm623_vm7, %vm622_vm8  ;;  %vm2069_vm7 = vcmask 1042434   ;;  %vm2072_vm8 = vcmask 1043459  }
  0xfd   : > { %v555_v35 = vpop.permute.xlu1 %554  ;;  %v551_v36 = vpop.permute.xlu0 %550 }
  0xfe   : > { %2563 = vmatmul.mubr.msk.bf16.gmra.mrb[56].mxu0 %vm2374_vm9, %v2721_v41  ;;  %vm625_vm10 = vcmp.eq.s32.totalorder %v555_v35, %v2858_v38  ;;  %vm624_vm11 = vcmp.eq.s32.totalorder %v551_v36, %v2858_v38  ;;  %vm2075_vm9 = vcmask 1044484  }
  0xff   : > { %vm2376_vm12 = vmpackc.low %vm625_vm10, %vm624_vm11  ;;  %vm2078_vm10 = vcmask 1045509   ;;  %vm2081_vm11 = vcmask 1046534  }
 0x100   : > { %2566 = vmatprep.mubr.msk.bf16.mxu0 %vm2376_vm12, %v2721_v41  ;;  %vm2084_vm12 = vcmask 1047559  }
 0x101   : > { %v563_v37 = vpop.permute.xlu1 %562  ;;  %v559_v39 = vpop.permute.xlu0 %558 }
 0x102   : > { %vm627_vm13 = vcmp.eq.s32.totalorder %v563_v37, %v2858_v38  ;;  %vm626_vm14 = vcmp.eq.s32.totalorder %v559_v39, %v2858_v38  ;;  %v2708_v38 = vld [vmem:[%s3309_s2 + $0x18] sm:$0xff]  }
 0x103   : > { %vm2378_vm15 = vmpackc.low %vm627_vm13, %vm626_vm14  ;;  %2576 = vmatprep.subr.bf16.mxu1 %v2708_v38 }
 0x104   : > { %2577 = vmatpush3.bf16.msra.mxu1 %v2708_v38 }
 0x106   : > { %2567 = vmatmul.mubr.msk.bf16.gmra.mrb[60].mxu0 %vm2378_vm15, %v2721_v41  ;;  %v2709_v41 = vld [vmem:[%s3309_s2 + $0x20] sm:$0xff]  }
 0x107   : > { %2578 = vmatprep.subr.bf16.mxu1 %v2709_v41 }
 0x108   : > { %2579 = vmatpush3.bf16.msra.mxu1 %v2709_v41 }
 0x109   : > { %2580 = vmatprep.subr.bf16.mxu1 %v2710_v44 }
 0x10c   : > { %2581 = vmatpush3.bf16.msra.mxu1 %v2710_v44 }
 0x10d   : > { %2582 = vmatprep.subr.bf16.mxu1 %v2711_v50 }
 0x110   : > { %2583 = vmatpush3.bf16.msra.mxu1 %v2711_v50 }
 0x111   : > { %2584 = vmatprep.subr.bf16.mxu1 %v2712_v54 }
 0x114   : > { %2585 = vmatpush3.bf16.msra.mxu1 %v2712_v54 }
 0x161   : > { %v2508_v45 = vpop.f32.mrb[0].mxu0 }
 0x162   : > { %v886_v46 = vpop.f32.mrb[1].mxu0 }
 0x163   : > { %v2509_v47 = vpop.f32.mrb[2].mxu0 }
 0x164   : > { %v1142_v48 = vpack.c.bf16 %v2509_v47, %v2508_v45  ;;  %v889_v49 = vpop.f32.mrb[3].mxu0 }
 0x165   : > { %v2983_v51 = vpack.c.bf16 %v889_v49, %v886_v46 }
 0x166   : > { %v1182_v52 = vshll.u32 %v1142_v48, 16  ;;  %v1432_v0 = vrot.slane %v1142_v48, 1 }
 0x167   : > { %v1177_v53 = vshll.u32 %v2983_v51, 16  ;;  %v1175_v56 = vshrl.u32 %v2983_v51, 16  ;;  %v1431_v4 = vrot.slane %v2983_v51, 1 }
 0x168   : > { %v1184_v59 = vrot.slane %v1182_v52, 1 }
 0x169   : > { %v2512_v55 = vpop.f32.mrb[4].mxu0  ;;  %v1179_v57 = vrot.slane %v1177_v53, 1  ;;  %v1433_v8 = vsel %vm1430_vm1, %v1431_v4, %v1432_v0 }
 0x16a   : > { %v902_v58 = vpop.f32.mrb[5].mxu0 }
 0x16b   : > { %v2513_v60 = vpop.f32.mrb[6].mxu0  ;;  %v1180_v61 = vor.u32 %v1179_v57, %v1175_v56 }
 0x16c   : > { %v1144_v62 = vpack.c.bf16 %v2513_v60, %v2512_v55  ;;  %v905_v63 = vpop.f32.mrb[7].mxu0 }
 0x16d   : > { %v2990_v1 = vpack.c.bf16 %v905_v63, %v902_v58  ;;  %v1185_v2 = vsel %vm1173_vm0, %v1180_v61, %v1184_v59 }
 0x16e   : > { %1366 = vrot.lane.b32.xlu0 %v1185_v2, %s2722_s15  ;;  %v1194_v5 = vshll.u32 %v1144_v62, 16  ;;  %v1435_v17 = vrot.slane %v1144_v62, 1 }
 0x16f   : > { %v1189_v6 = vshll.u32 %v2990_v1, 16  ;;  %v1187_v9 = vshrl.u32 %v2990_v1, 16  ;;  %v1434_v20 = vrot.slane %v2990_v1, 1 }
 0x170   : > { %v1196_v12 = vrot.slane %v1194_v5, 1 }
 0x171   : > { %v2516_v7 = vpop.f32.mrb[8].mxu0  ;;  %v1191_v10 = vrot.slane %v1189_v6, 1  ;;  %v1436_v24 = vsel %vm1430_vm1, %v1434_v20, %v1435_v17 }
 0x172   : > { %1479 = vrot.lane.b32.xlu0 %v1433_v8, %s2723_s16  ;;  %v918_v11 = vpop.f32.mrb[9].mxu0 }
 0x173   : > { %v2517_v13 = vpop.f32.mrb[10].mxu0  ;;  %v1192_v14 = vor.u32 %v1191_v10, %v1187_v9 }
 0x174   : > { %v1146_v15 = vpack.c.bf16 %v2517_v13, %v2516_v7  ;;  %v921_v16 = vpop.f32.mrb[11].mxu0 }
 0x175   : > { %v2999_v18 = vpack.c.bf16 %v921_v16, %v918_v11  ;;  %v1197_v19 = vsel %vm1173_vm0, %v1192_v14, %v1196_v12 }
 0x176   : > { %1368 = vrot.lane.b32.xlu1 %v1197_v19, %s2722_s15  ;;  %v1206_v21 = vshll.u32 %v1146_v15, 16  ;;  %v1438_v33 = vrot.slane %v1146_v15, 1 }
 0x177   : > { %v1201_v22 = vshll.u32 %v2999_v18, 16  ;;  %v1199_v25 = vshrl.u32 %v2999_v18, 16  ;;  %v1437_v36 = vrot.slane %v2999_v18, 1 }
 0x178   : > { %v1208_v28 = vrot.slane %v1206_v21, 1 }
 0x179   : > { %v2520_v23 = vpop.f32.mrb[12].mxu0  ;;  %v1203_v26 = vrot.slane %v1201_v22, 1  ;;  %v1439_v42 = vsel %vm1430_vm1, %v1437_v36, %v1438_v33 }
 0x17a   : > { %1481 = vrot.lane.b32.xlu1 %v1436_v24, %s2723_s16  ;;  %v934_v27 = vpop.f32.mrb[13].mxu0 }
 0x17b   : > { %v2521_v29 = vpop.f32.mrb[14].mxu0  ;;  %v1204_v30 = vor.u32 %v1203_v26, %v1199_v25 }
 0x17c   : > { %v1148_v31 = vpack.c.bf16 %v2521_v29, %v2520_v23  ;;  %v937_v32 = vpop.f32.mrb[15].mxu0 }
 0x17d   : > { %v3008_v34 = vpack.c.bf16 %v937_v32, %v934_v27  ;;  %v1209_v35 = vsel %vm1173_vm0, %v1204_v30, %v1208_v28 }
 0x17e   : > { %1370 = vrot.lane.b32.xlu0 %v1209_v35, %s2722_s15  ;;  %v1218_v37 = vshll.u32 %v1148_v31, 16  ;;  %v1441_v49 = vrot.slane %v1148_v31, 1 }
 0x17f   : > { %v1213_v39 = vshll.u32 %v3008_v34, 16  ;;  %v1211_v43 = vshrl.u32 %v3008_v34, 16  ;;  %v1440_v53 = vrot.slane %v3008_v34, 1 }
 0x180   : > { %v1220_v44 = vrot.slane %v1218_v37, 1 }
 0x181   : > { %v2524_v40 = vpop.f32.mrb[16].mxu0  ;;  %v1215_v38 = vrot.slane %v1213_v39, 1  ;;  %v1442_v57 = vsel %vm1430_vm1, %v1440_v53, %v1441_v49 }
 0x182   : > { %1483 = vrot.lane.b32.xlu0 %v1439_v42, %s2723_s16  ;;  %v950_v41 = vpop.f32.mrb[17].mxu0 }
 0x183   : > { %v2525_v45 = vpop.f32.mrb[18].mxu0  ;;  %v1216_v46 = vor.u32 %v1215_v38, %v1211_v43 }
 0x184   : > { %v1150_v47 = vpack.c.bf16 %v2525_v45, %v2524_v40  ;;  %v953_v48 = vpop.f32.mrb[19].mxu0 }
 0x185   : > { %v3017_v50 = vpack.c.bf16 %v953_v48, %v950_v41  ;;  %v1221_v52 = vsel %vm1173_vm0, %v1216_v46, %v1220_v44 }
 0x186   : > { %1372 = vrot.lane.b32.xlu1 %v1221_v52, %s2722_s15  ;;  %v1230_v54 = vshll.u32 %v1150_v47, 16  ;;  %v1444_v4 = vrot.slane %v1150_v47, 1 }
 0x187   : > { %v1225_v55 = vshll.u32 %v3017_v50, 16  ;;  %v1223_v58 = vshrl.u32 %v3017_v50, 16  ;;  %v1443_v7 = vrot.slane %v3017_v50, 1 }
 0x188   : > { %v1232_v61 = vrot.slane %v1230_v54, 1 }
 0x189   : > { %v2528_v56 = vpop.f32.mrb[20].mxu0  ;;  %v1227_v59 = vrot.slane %v1225_v55, 1  ;;  %v1445_v11 = vsel %vm1430_vm1, %v1443_v7, %v1444_v4 }
 0x18a   : > { %1485 = vrot.lane.b32.xlu1 %v1442_v57, %s2723_s16  ;;  %v966_v60 = vpop.f32.mrb[21].mxu0 }
 0x18b   : > { %v2529_v62 = vpop.f32.mrb[22].mxu0  ;;  %v1228_v63 = vor.u32 %v1227_v59, %v1223_v58 }
 0x18c   : > { %v1152_v0 = vpack.c.bf16 %v2529_v62, %v2528_v56  ;;  %v969_v2 = vpop.f32.mrb[23].mxu0 }
 0x18d   : > { %v3026_v5 = vpack.c.bf16 %v969_v2, %v966_v60  ;;  %v1233_v6 = vsel %vm1173_vm0, %v1228_v63, %v1232_v61 }
 0x18e   : > { %1374 = vrot.lane.b32.xlu0 %v1233_v6, %s2722_s15  ;;  %v1242_v8 = vshll.u32 %v1152_v0, 16  ;;  %v1447_v21 = vrot.slane %v1152_v0, 1 }
 0x18f   : > { %v1237_v9 = vshll.u32 %v3026_v5, 16  ;;  %v1235_v12 = vshrl.u32 %v3026_v5, 16  ;;  %v1446_v24 = vrot.slane %v3026_v5, 1 }
 0x190   : > { %v1244_v15 = vrot.slane %v1242_v8, 1 }
 0x191   : > { %v2532_v10 = vpop.f32.mrb[24].mxu0  ;;  %v1239_v13 = vrot.slane %v1237_v9, 1  ;;  %v1448_v28 = vsel %vm1430_vm1, %v1446_v24, %v1447_v21 }
 0x192   : > { %1487 = vrot.lane.b32.xlu0 %v1445_v11, %s2723_s16  ;;  %v982_v14 = vpop.f32.mrb[25].mxu0 }
 0x193   : > { %v2533_v16 = vpop.f32.mrb[26].mxu0  ;;  %v1240_v17 = vor.u32 %v1239_v13, %v1235_v12 }
 0x194   : > { %v1154_v19 = vpack.c.bf16 %v2533_v16, %v2532_v10  ;;  %v985_v20 = vpop.f32.mrb[27].mxu0 }
 0x195   : > { %v3035_v22 = vpack.c.bf16 %v985_v20, %v982_v14  ;;  %v1245_v23 = vsel %vm1173_vm0, %v1240_v17, %v1244_v15 }
 0x196   : > { %1376 = vrot.lane.b32.xlu1 %v1245_v23, %s2722_s15  ;;  %v1254_v25 = vshll.u32 %v1154_v19, 16  ;;  %v1450_v39 = vrot.slane %v1154_v19, 1 }
 0x197   : > { %v1249_v26 = vshll.u32 %v3035_v22, 16  ;;  %v1247_v29 = vshrl.u32 %v3035_v22, 16  ;;  %v1449_v43 = vrot.slane %v3035_v22, 1 }
 0x198   : > { %v1256_v32 = vrot.slane %v1254_v25, 1 }
 0x199   : > { %v2536_v27 = vpop.f32.mrb[28].mxu0  ;;  %v1251_v30 = vrot.slane %v1249_v26, 1  ;;  %v1451_v45 = vsel %vm1430_vm1, %v1449_v43, %v1450_v39 }
 0x19a   : > { %1489 = vrot.lane.b32.xlu1 %v1448_v28, %s2723_s16  ;;  %v998_v31 = vpop.f32.mrb[29].mxu0 }
 0x19b   : > { %v2537_v33 = vpop.f32.mrb[30].mxu0  ;;  %v1252_v35 = vor.u32 %v1251_v30, %v1247_v29 }
 0x19c   : > { %v1156_v36 = vpack.c.bf16 %v2537_v33, %v2536_v27  ;;  %v1001_v37 = vpop.f32.mrb[31].mxu0 }
 0x19d   : > { %v3044_v40 = vpack.c.bf16 %v1001_v37, %v998_v31  ;;  %v1257_v42 = vsel %vm1173_vm0, %v1252_v35, %v1256_v32 }
 0x19e   : > { %1378 = vrot.lane.b32.xlu0 %v1257_v42, %s2722_s15  ;;  %v1266_v38 = vshll.u32 %v1156_v36, 16  ;;  %v1453_v56 = vrot.slane %v1156_v36, 1 }
 0x19f   : > { %v1261_v41 = vshll.u32 %v3044_v40, 16  ;;  %v1259_v46 = vshrl.u32 %v3044_v40, 16  ;;  %v1452_v59 = vrot.slane %v3044_v40, 1 }
 0x1a0   : > { %v1268_v49 = vrot.slane %v1266_v38, 1 }
 0x1a1   : > { %v2540_v44 = vpop.f32.mrb[32].mxu0  ;;  %v1263_v47 = vrot.slane %v1261_v41, 1  ;;  %v1454_v63 = vsel %vm1430_vm1, %v1452_v59, %v1453_v56 }
 0x1a2   : > { %1491 = vrot.lane.b32.xlu0 %v1451_v45, %s2723_s16  ;;  %v1014_v48 = vpop.f32.mrb[33].mxu0 }
 0x1a3   : > { %v2541_v52 = vpop.f32.mrb[34].mxu0  ;;  %v1264_v53 = vor.u32 %v1263_v47, %v1259_v46 }
 0x1a4   : > { %v1158_v54 = vpack.c.bf16 %v2541_v52, %v2540_v44  ;;  %v1017_v55 = vpop.f32.mrb[35].mxu0 }
 0x1a5   : > { %v3053_v57 = vpack.c.bf16 %v1017_v55, %v1014_v48  ;;  %v1269_v58 = vsel %vm1173_vm0, %v1264_v53, %v1268_v49 }
 0x1a6   : > { %1380 = vrot.lane.b32.xlu1 %v1269_v58, %s2722_s15  ;;  %v1278_v60 = vshll.u32 %v1158_v54, 16  ;;  %v1456_v11 = vrot.slane %v1158_v54, 1 }
 0x1a7   : > { %v1273_v61 = vshll.u32 %v3053_v57, 16  ;;  %v1271_v0 = vshrl.u32 %v3053_v57, 16  ;;  %v1455_v14 = vrot.slane %v3053_v57, 1 }
 0x1a8   : > { %v1280_v6 = vrot.slane %v1278_v60, 1 }
 0x1a9   : > { %v2544_v62 = vpop.f32.mrb[36].mxu0  ;;  %v1275_v2 = vrot.slane %v1273_v61, 1  ;;  %v1457_v19 = vsel %vm1430_vm1, %v1455_v14, %v1456_v11 }
 0x1aa   : > { %1493 = vrot.lane.b32.xlu1 %v1454_v63, %s2723_s16  ;;  %v1030_v4 = vpop.f32.mrb[37].mxu0 }
 0x1ab   : > { %v2545_v7 = vpop.f32.mrb[38].mxu0  ;;  %v1276_v8 = vor.u32 %v1275_v2, %v1271_v0 }
 0x1ac   : > { %v1160_v9 = vpack.c.bf16 %v2545_v7, %v2544_v62  ;;  %v1033_v10 = vpop.f32.mrb[39].mxu0 }
 0x1ad   : > { %v3062_v12 = vpack.c.bf16 %v1033_v10, %v1030_v4  ;;  %v1281_v13 = vsel %vm1173_vm0, %v1276_v8, %v1280_v6 }
 0x1ae   : > { %1382 = vrot.lane.b32.xlu0 %v1281_v13, %s2722_s15  ;;  %v1290_v15 = vshll.u32 %v1160_v9, 16  ;;  %v1459_v29 = vrot.slane %v1160_v9, 1 }
 0x1af   : > { %v1285_v16 = vshll.u32 %v3062_v12, 16  ;;  %v1283_v20 = vshrl.u32 %v3062_v12, 16  ;;  %v1458_v32 = vrot.slane %v3062_v12, 1 }
 0x1b0   : > { %v1292_v24 = vrot.slane %v1290_v15, 1 }
 0x1b1   : > { %v2548_v17 = vpop.f32.mrb[40].mxu0  ;;  %v1287_v21 = vrot.slane %v1285_v16, 1  ;;  %v1460_v37 = vsel %vm1430_vm1, %v1458_v32, %v1459_v29 }
 0x1b2   : > { %1495 = vrot.lane.b32.xlu0 %v1457_v19, %s2723_s16  ;;  %v1046_v23 = vpop.f32.mrb[41].mxu0 }
 0x1b3   : > { %v2549_v25 = vpop.f32.mrb[42].mxu0  ;;  %v1288_v26 = vor.u32 %v1287_v21, %v1283_v20 }
 0x1b4   : > { %v1162_v27 = vpack.c.bf16 %v2549_v25, %v2548_v17  ;;  %v1049_v28 = vpop.f32.mrb[43].mxu0 }
 0x1b5   : > { %v3071_v30 = vpack.c.bf16 %v1049_v28, %v1046_v23  ;;  %v1293_v31 = vsel %vm1173_vm0, %v1288_v26, %v1292_v24 }
 0x1b6   : > { %1384 = vrot.lane.b32.xlu1 %v1293_v31, %s2722_s15  ;;  %v1302_v33 = vshll.u32 %v1162_v27, 16  ;;  %v1462_v47 = vrot.slane %v1162_v27, 1 }
 0x1b7   : > { %v1297_v35 = vshll.u32 %v3071_v30, 16  ;;  %v1295_v39 = vshrl.u32 %v3071_v30, 16  ;;  %v1461_v52 = vrot.slane %v3071_v30, 1 }
 0x1b8   : > { %v1304_v38 = vrot.slane %v1302_v33, 1 }
 0x1b9   : > { %v2552_v36 = vpop.f32.mrb[44].mxu0  ;;  %v1299_v42 = vrot.slane %v1297_v35, 1  ;;  %v1463_v56 = vsel %vm1430_vm1, %v1461_v52, %v1462_v47 }
 0x1ba   : > { %1497 = vrot.lane.b32.xlu1 %v1460_v37, %s2723_s16  ;;  %v1062_v43 = vpop.f32.mrb[45].mxu0 }
 0x1bb   : > { %v2553_v41 = vpop.f32.mrb[46].mxu0  ;;  %v1300_v44 = vor.u32 %v1299_v42, %v1295_v39 }
 0x1bc   : > { %v1164_v45 = vpack.c.bf16 %v2553_v41, %v2552_v36  ;;  %v1065_v46 = vpop.f32.mrb[47].mxu0 }
 0x1bd   : > { %v3080_v48 = vpack.c.bf16 %v1065_v46, %v1062_v43  ;;  %v1305_v49 = vsel %vm1173_vm0, %v1300_v44, %v1304_v38 }
 0x1be   : > { %1386 = vrot.lane.b32.xlu0 %v1305_v49, %s2722_s15  ;;  %v1314_v53 = vshll.u32 %v1164_v45, 16  ;;  %v1465_v4 = vrot.slane %v1164_v45, 1 }
 0x1bf   : > { %v1309_v54 = vshll.u32 %v3080_v48, 16  ;;  %v1307_v58 = vshrl.u32 %v3080_v48, 16  ;;  %v1464_v8 = vrot.slane %v3080_v48, 1 }
 0x1c0   : > { %v1316_v61 = vrot.slane %v1314_v53, 1 }
 0x1c1   : > { %v2556_v55 = vpop.f32.mrb[48].mxu0  ;;  %v1311_v59 = vrot.slane %v1309_v54, 1  ;;  %v1466_v13 = vsel %vm1430_vm1, %v1464_v8, %v1465_v4 }
 0x1c2   : > { %1499 = vrot.lane.b32.xlu0 %v1463_v56, %s2723_s16  ;;  %v1078_v60 = vpop.f32.mrb[49].mxu0 }
 0x1c3   : > { %v2557_v62 = vpop.f32.mrb[50].mxu0  ;;  %v1312_v63 = vor.u32 %v1311_v59, %v1307_v58 }
 0x1c4   : > { %v1166_v0 = vpack.c.bf16 %v2557_v62, %v2556_v55  ;;  %v1081_v2 = vpop.f32.mrb[51].mxu0 }
 0x1c5   : > { %v3089_v6 = vpack.c.bf16 %v1081_v2, %v1078_v60  ;;  %v1317_v7 = vsel %vm1173_vm0, %v1312_v63, %v1316_v61 }
 0x1c6   : > { %1388 = vrot.lane.b32.xlu1 %v1317_v7, %s2722_s15  ;;  %v1326_v9 = vshll.u32 %v1166_v0, 16  ;;  %v1468_v24 = vrot.slane %v1166_v0, 1 }
 0x1c7   : > { %v1321_v10 = vshll.u32 %v3089_v6, 16  ;;  %v1319_v14 = vshrl.u32 %v3089_v6, 16  ;;  %v1467_v27 = vrot.slane %v3089_v6, 1 }
 0x1c8   : > { %v1328_v17 = vrot.slane %v1326_v9, 1 }
 0x1c9   : > { %v2560_v11 = vpop.f32.mrb[52].mxu0  ;;  %v1323_v15 = vrot.slane %v1321_v10, 1  ;;  %v1469_v32 = vsel %vm1430_vm1, %v1467_v27, %v1468_v24 }
 0x1ca   : > { %1501 = vrot.lane.b32.xlu1 %v1466_v13, %s2723_s16  ;;  %v1094_v16 = vpop.f32.mrb[53].mxu0 }
 0x1cb   : > { %v2561_v19 = vpop.f32.mrb[54].mxu0  ;;  %v1324_v20 = vor.u32 %v1323_v15, %v1319_v14 }
 0x1cc   : > { %v1168_v21 = vpack.c.bf16 %v2561_v19, %v2560_v11  ;;  %v1097_v23 = vpop.f32.mrb[55].mxu0 }
 0x1cd   : > { %v3098_v25 = vpack.c.bf16 %v1097_v23, %v1094_v16  ;;  %v1329_v26 = vsel %vm1173_vm0, %v1324_v20, %v1328_v17 }
 0x1ce   : > { %1390 = vrot.lane.b32.xlu0 %v1329_v26, %s2722_s15  ;;  %v1338_v28 = vshll.u32 %v1168_v21, 16  ;;  %v1471_v41 = vrot.slane %v1168_v21, 1 }
 0x1cf   : > { %v1333_v29 = vshll.u32 %v3098_v25, 16  ;;  %v1331_v33 = vshrl.u32 %v3098_v25, 16  ;;  %v1470_v46 = vrot.slane %v3098_v25, 1 }
 0x1d0   : > { %v1340_v37 = vrot.slane %v1338_v28, 1 }
 0x1d1   : > { %v2564_v31 = vpop.f32.mrb[56].mxu0  ;;  %v1335_v35 = vrot.slane %v1333_v29, 1  ;;  %v1472_v53 = vsel %vm1430_vm1, %v1470_v46, %v1471_v41 }
 0x1d2   : > { %1503 = vrot.lane.b32.xlu0 %v1469_v32, %s2723_s16  ;;  %v1110_v36 = vpop.f32.mrb[57].mxu0 }
 0x1d3   : > { %v2565_v39 = vpop.f32.mrb[58].mxu0  ;;  %v1336_v42 = vor.u32 %v1335_v35, %v1331_v33 }
 0x1d4   : > { %v1170_v43 = vpack.c.bf16 %v2565_v39, %v2564_v31  ;;  %v1113_v38 = vpop.f32.mrb[59].mxu0 }
 0x1d5   : > { %v3107_v44 = vpack.c.bf16 %v1113_v38, %v1110_v36  ;;  %v1341_v45 = vsel %vm1173_vm0, %v1336_v42, %v1340_v37 }
 0x1d6   : > { %1392 = vrot.lane.b32.xlu1 %v1341_v45, %s2722_s15  ;;  %v1350_v47 = vshll.u32 %v1170_v43, 16  ;;  %v1474_v63 = vrot.slane %v1170_v43, 1 }
 0x1d7   : > { %v1345_v49 = vshll.u32 %v3107_v44, 16  ;;  %v1343_v54 = vshrl.u32 %v3107_v44, 16  ;;  %v1473_v4 = vrot.slane %v3107_v44, 1 }
 0x1d8   : > { %v1352_v58 = vrot.slane %v1350_v47, 1 }
 0x1d9   : > { %v2568_v52 = vpop.f32.mrb[60].mxu0  ;;  %v1347_v55 = vrot.slane %v1345_v49, 1  ;;  %v1475_v10 = vsel %vm1430_vm1, %v1473_v4, %v1474_v63 }
 0x1da   : > { %1505 = vrot.lane.b32.xlu1 %v1472_v53, %s2723_s16  ;;  %v1126_v56 = vpop.f32.mrb[61].mxu0 }
 0x1db   : > { %v2569_v59 = vpop.f32.mrb[62].mxu0  ;;  %v1348_v60 = vor.u32 %v1347_v55, %v1343_v54 }
 0x1dc   : > { %v1172_v61 = vpack.c.bf16 %v2569_v59, %v2568_v52  ;;  %v1129_v62 = vpop.f32.mrb[63].mxu0 }
 0x1dd   : > { %v3116_v0 = vpack.c.bf16 %v1129_v62, %v1126_v56  ;;  %v1353_v2 = vsel %vm1173_vm0, %v1348_v60, %v1352_v58 }
 0x1de   : > { %1394 = vrot.lane.b32.xlu0 %v1353_v2, %s2722_s15  ;;  %v1362_v7 = vshll.u32 %v1172_v61, 16  ;;  %v1477_v19 = vrot.slane %v1172_v61, 1 }
 0x1df   : > { %v1357_v8 = vshll.u32 %v3116_v0, 16  ;;  %v1355_v11 = vshrl.u32 %v3116_v0, 16  ;;  %v1476_v23 = vrot.slane %v3116_v0, 1 }
 0x1e0   : > { %v1367_v9 = vpop.permute.xlu0 %1366  ;;  %v1364_v14 = vrot.slane %v1362_v7, 1 }
 0x1e1   : > { %v1359_v13 = vrot.slane %v1357_v8, 1  ;;  %v1513_v16 = vsel %vm1511_vm2, %v2983_v51, %v1367_v9  ;;  %v1478_v26 = vsel %vm1430_vm1, %v1476_v23, %v1477_v19 }
 0x1e2   : > { %1507 = vrot.lane.b32.xlu0 %v1475_v10, %s2723_s16 }
 0x1e3   : > { %v1360_v15 = vor.u32 %v1359_v13, %v1355_v11 }
 0x1e4   : > { %v1480_v17 = vpop.permute.xlu0 %1479 }
 0x1e5   : > { %v1365_v20 = vsel %vm1173_vm0, %v1360_v15, %v1364_v14  ;;  %v1546_v21 = vsel %vm1544_vm3, %v1513_v16, %v1480_v17 }
 0x1e6   : > { %1396 = vrot.lane.b32.xlu1 %v1365_v20, %s2722_s15  ;;  %2586 = vmatprep.mubr.msk.bf16.mxu1 %vm1577_vm4, %v1546_v21 }
 0x1e8   : > { %v1369_v24 = vpop.permute.xlu1 %1368 }
 0x1e9   : > { %v1515_v51 = vsel %vm1511_vm2, %v2990_v1, %v1369_v24  ;;  %v2026_v24 = vld [vmem:[%s3311_s4] sm:$0xff] }
 0x1ea   : > { %1509 = vrot.lane.b32.xlu1 %v1478_v26, %s2723_s16 }
 0x1ec   : > { %v1482_v27 = vpop.permute.xlu1 %1481 }
 0x1ed   : > { %v1548_v28 = vsel %vm1544_vm3, %v1515_v51, %v1482_v27  ;;  %v2029_v51 = vld [vmem:[%s3311_s4 + $0x18] sm:$0xff]  ;;  %v2030_v27 = vld [vmem:[%s3311_s4 + $0x20] sm:$0xff] }
 0x1ee   : > { %2587 = vmatmul.mubr.msk.bf16.vlgmr.msra.gmra.mrb[0].mxu1 %vm1577_vm4, %v1548_v28 }
 0x1f0   : > { %v1371_v29 = vpop.permute.xlu0 %1370 }
 0x1f1   : > { %v1517_v31 = vsel %vm1511_vm2, %v2999_v18, %v1371_v29  ;;  %v2031_v29 = vld [vmem:[%s3311_s4 + $0x28] sm:$0xff] }
 0x1f4   : > { %v1484_v32 = vpop.permute.xlu0 %1483 }
 0x1f5   : > { %v1550_v33 = vsel %vm1544_vm3, %v1517_v31, %v1484_v32  ;;  %v2661_v31 = vpack.c.bf16 %v2031_v29, %v2030_v27  ;;  %v2032_v32 = vld [vmem:[%s3311_s4 + $0x30] sm:$0xff] }
 0x1f6   : > { %2590 = vmatprep.mubr.msk.bf16.mxu1 %vm1577_vm4, %v1550_v33  ;;  %v2033_v33 = vld [vmem:[%s3311_s4 + $0x38] sm:$0xff] }
 0x1f8   : > { %v1373_v35 = vpop.permute.xlu1 %1372 }
 0x1f9   : > { %v1519_v36 = vsel %vm1511_vm2, %v3008_v34, %v1373_v35  ;;  %v2665_v35 = vpack.c.bf16 %v2033_v33, %v2032_v32 }
 0x1fc   : > { %v1486_v37 = vpop.permute.xlu1 %1485 }
 0x1fd   : > { %v1552_v1 = vsel %vm1544_vm3, %v1519_v36, %v1486_v37  ;;  %v2034_v36 = vld [vmem:[%s3311_s4 + $0x40] sm:$0xff]  ;;  %v2035_v37 = vld [vmem:[%s3311_s4 + $0x48] sm:$0xff] }
 0x1fe   : > { %2591 = vmatmul.mubr.msk.bf16.gmra.mrb[4].mxu1 %vm1577_vm4, %v1552_v1  ;;  %v1838_v1 = vadd.s32 8, %v2775_v3 }
 0x200   : > { %v1375_v39 = vpop.permute.xlu0 %1374  ;;  %vm1840_vm5 = vcmp.lt.s32.totalorder %v1838_v1, 14 }
 0x201   : > { %v1521_v42 = vsel %vm1511_vm2, %v3017_v50, %v1375_v39  ;;  %v2669_v39 = vpack.c.bf16 %v2035_v37, %v2034_v36 }
 0x204   : > { %v1488_v43 = vpop.permute.xlu0 %1487 }
 0x205   : > { %v1554_v18 = vsel %vm1544_vm3, %v1521_v42, %v1488_v43  ;;  %v2036_v42 = vld [vmem:[%s3311_s4 + $0x50] sm:$0xff]  ;;  %v2037_v43 = vld [vmem:[%s3311_s4 + $0x58] sm:$0xff] }
 0x206   : > { %2594 = vmatprep.mubr.msk.bf16.mxu1 %vm1577_vm4, %v1554_v18  ;;  %v2673_v18 = vpack.c.bf16 %v2037_v43, %v2036_v42 }
 0x208   : > { %v1377_v38 = vpop.permute.xlu1 %1376 }
 0x209   : > { %v1523_v41 = vsel %vm1511_vm2, %v3026_v5, %v1377_v38 }
 0x20c   : > { %v1490_v45 = vpop.permute.xlu1 %1489 }
 0x20d   : > { %v1556_v34 = vsel %vm1544_vm3, %v1523_v41, %v1490_v45  ;;  %v2724_v41 = vmov -1e+30  }
 0x20e   : > { %2595 = vmatmul.mubr.msk.bf16.gmra.mrb[8].mxu1 %vm1577_vm4, %v1556_v34  ;;  %v3231_v45 = vsel %vm1840_vm5, 0.0, %v2724_v41  ;;  %v2038_v34 = vld [vmem:[%s3311_s4 + $0x60] sm:$0xff] }
 0x210   : > { %v1379_v46 = vpop.permute.xlu0 %1378 }
 0x211   : > { %v1525_v47 = vsel %vm1511_vm2, %v3035_v22, %v1379_v46  ;;  %v2039_v46 = vld [vmem:[%s3311_s4 + $0x68] sm:$0xff] }
 0x214   : > { %v1492_v49 = vpop.permute.xlu0 %1491 }
 0x215   : > { %v1558_v50 = vsel %vm1544_vm3, %v1525_v47, %v1492_v49  ;;  %v2677_v49 = vpack.c.bf16 %v2039_v46, %v2038_v34 }
 0x216   : > { %2598 = vmatprep.mubr.msk.bf16.mxu1 %vm1577_vm4, %v1558_v50 }
 0x218   : > { %v1381_v52 = vpop.permute.xlu1 %1380 }
 0x219   : > { %v1527_v53 = vsel %vm1511_vm2, %v3044_v40, %v1381_v52 }
 0x21c   : > { %v1494_v54 = vpop.permute.xlu1 %1493 }
 0x21d   : > { %v1560_v5 = vsel %vm1544_vm3, %v1527_v53, %v1494_v54 }
 0x21e   : > { %2599 = vmatmul.mubr.msk.bf16.gmra.mrb[12].mxu1 %vm1577_vm4, %v1560_v5  ;;  %v2040_v5 = vld [vmem:[%s3311_s4 + $0x70] sm:$0xff] }
 0x220   : > { %v1383_v55 = vpop.permute.xlu0 %1382 }
 0x221   : > { %v1529_v56 = vsel %vm1511_vm2, %v3053_v57, %v1383_v55  ;;  %v2041_v55 = vld [vmem:[%s3311_s4 + $0x78] sm:$0xff] }
 0x224   : > { %v1496_v58 = vpop.permute.xlu0 %1495 }
 0x225   : > { %v1562_v22 = vsel %vm1544_vm3, %v1529_v56, %v1496_v58  ;;  %v2681_v58 = vpack.c.bf16 %v2041_v55, %v2040_v5 }
 0x226   : > { %2602 = vmatprep.mubr.msk.bf16.mxu1 %vm1577_vm4, %v1562_v22 }
 0x228   : > { %v1385_v59 = vpop.permute.xlu1 %1384 }
 0x229   : > { %v1531_v60 = vsel %vm1511_vm2, %v3062_v12, %v1385_v59 }
 0x22c   : > { %v1498_v61 = vpop.permute.xlu1 %1497 }
 0x22d   : > { %v1564_v40 = vsel %vm1544_vm3, %v1531_v60, %v1498_v61 }
 0x22e   : > { %2603 = vmatmul.mubr.msk.bf16.gmra.mrb[16].mxu1 %vm1577_vm4, %v1564_v40 }
 0x230   : > { %v1387_v62 = vpop.permute.xlu0 %1386 }
 0x231   : > { %v1533_v63 = vsel %vm1511_vm2, %v3071_v30, %v1387_v62 }
 0x234   : > { %v1500_v2 = vpop.permute.xlu0 %1499 }
 0x235   : > { %v1566_v57 = vsel %vm1544_vm3, %v1533_v63, %v1500_v2 }
 0x236   : > { %2606 = vmatprep.mubr.msk.bf16.mxu1 %vm1577_vm4, %v1566_v57 }
 0x238   : > { %v1389_v4 = vpop.permute.xlu1 %1388 }
 0x239   : > { %v1535_v7 = vsel %vm1511_vm2, %v3080_v48, %v1389_v4  ;;  %v3250_v4 = vld [vmem:[%s3310_s3] ss:$0 sm:$0xff] }
 0x23c   : > { %v1502_v8 = vpop.permute.xlu1 %1501 }
 0x23d   : > { %v1568_v12 = vsel %vm1544_vm3, %v1535_v7, %v1502_v8 }
 0x23e   : > { %2607 = vmatmul.mubr.msk.bf16.gmra.mrb[20].mxu1 %vm1577_vm4, %v1568_v12 }
 0x240   : > { %v1391_v9 = vpop.permute.xlu0 %1390 }
 0x241   : > { %v1537_v10 = vsel %vm1511_vm2, %v3089_v6, %v1391_v9 }
 0x244   : > { %v1504_v11 = vpop.permute.xlu0 %1503 }
 0x245   : > { %v1570_v30 = vsel %vm1544_vm3, %v1537_v10, %v1504_v11 }
 0x246   : > { %2610 = vmatprep.mubr.msk.bf16.mxu1 %vm1577_vm4, %v1570_v30 }
 0x248   : > { %v1393_v13 = vpop.permute.xlu1 %1392 }
 0x249   : > { %v1539_v14 = vsel %vm1511_vm2, %v3098_v25, %v1393_v13 }
 0x24c   : > { %v1506_v15 = vpop.permute.xlu1 %1505 }
 0x24d   : > { %v1572_v48 = vsel %vm1544_vm3, %v1539_v14, %v1506_v15 }
 0x24e   : > { %2611 = vmatmul.mubr.msk.bf16.gmra.mrb[24].mxu1 %vm1577_vm4, %v1572_v48 }
 0x250   : > { %v1395_v16 = vpop.permute.xlu0 %1394 }
 0x251   : > { %v1541_v17 = vsel %vm1511_vm2, %v3107_v44, %v1395_v16  ;;  %v2027_v44 = vld [vmem:[%s3311_s4 + $0x8] sm:$0xff] }
 0x252   : > { %v2653_v26 = vpack.c.bf16 %v2027_v44, %v2026_v24 }
 0x254   : > { %v1508_v19 = vpop.permute.xlu0 %1507  ;;  %2654 = vmatprep.subr.bf16.mxu1 %v2653_v26 }
 0x255   : > { %v1574_v6 = vsel %vm1544_vm3, %v1541_v17, %v1508_v19  ;;  %2656 = vmatpush3.bf16.msra.mxu1 %v2653_v26 }
 0x256   : > { %2614 = vmatprep.mubr.msk.bf16.mxu1 %vm1577_vm4, %v1574_v6 }
 0x258   : > { %v1397_v20 = vpop.permute.xlu1 %1396 }
 0x259   : > { %v1543_v21 = vsel %vm1511_vm2, %v3116_v0, %v1397_v20  ;;  %v2028_v0 = vld [vmem:[%s3311_s4 + $0x10] sm:$0xff] }
 0x25a   : > { %v2657_v28 = vpack.c.bf16 %v2029_v51, %v2028_v0 }
 0x25c   : > { %v1510_v23 = vpop.permute.xlu1 %1509  ;;  %2658 = vmatprep.subr.bf16.mxu1 %v2657_v28 }
 0x25d   : > { %v1576_v25 = vsel %vm1544_vm3, %v1543_v21, %v1510_v23  ;;  %2660 = vmatpush3.bf16.msra.mxu1 %v2657_v28 }
 0x25e   : > { %2615 = vmatmul.mubr.msk.bf16.gmra.mrb[28].mxu1 %vm1577_vm4, %v1576_v25  ;;  %2662 = vmatprep.subr.bf16.mxu1 %v2661_v31 }
 0x261   : > { %2664 = vmatpush3.bf16.msra.mxu1 %v2661_v31 }
 0x262   : > { %2666 = vmatprep.subr.bf16.mxu1 %v2665_v35 }
 0x265   : > { %2668 = vmatpush3.bf16.msra.mxu1 %v2665_v35 }
 0x266   : > { %2670 = vmatprep.subr.bf16.mxu1 %v2669_v39 }
 0x269   : > { %2672 = vmatpush3.bf16.msra.mxu1 %v2669_v39 }
 0x26a   : > { %2674 = vmatprep.subr.bf16.mxu1 %v2673_v18 }
 0x26d   : > { %2676 = vmatpush3.bf16.msra.mxu1 %v2673_v18 }
 0x26e   : > { %2678 = vmatprep.subr.bf16.mxu1 %v2677_v49 }
 0x271   : > { %2680 = vmatpush3.bf16.msra.mxu1 %v2677_v49 }
 0x272   : > { %2682 = vmatprep.subr.bf16.mxu1 %v2681_v58 }
 0x275   : > { %2684 = vmatpush3.bf16.msra.mxu1 %v2681_v58 }
 0x2c1   : > { %v2588_v38 = vpop.f32.mrb[0].mxu1 }
 0x2c2   : > { %v1709_v3 = vpop.f32.mrb[1].mxu1 }
 0x2c3   : > { %v2589_v47 = vpop.f32.mrb[2].mxu1 }
 0x2c4   : > { %v1846_v50 = vadd.f32 %v2589_v47, %v3231_v45  ;;  %v1712_v52 = vpop.f32.mrb[3].mxu1 }
 0x2c5   : > { %v1844_v53 = vadd.f32 %v3231_v45, %v1712_v52 }
 0x2c6   : > { %v1882_v54 = vmax.f32 %v2588_v38, %v1846_v50 }
 0x2c7   : > { %v1875_v56 = vmax.f32 %v1709_v3, %v1844_v53 }
 0x2c8   : > { %v1883_v22 = vrot.slane %v1882_v54, 4 }
 0x2c9   : > { %v1876_v59 = vrot.slane %v1875_v56, 4 }
 0x2ca   : > { %v1884_v60 = vmax.f32 %v1882_v54, %v1883_v22 }
 0x2cb   : > { %v1877_v61 = vmax.f32 %v1875_v56, %v1876_v59 }
 0x2cc   : > { %v1885_v40 = vrot.slane %v1884_v60, 2 }
 0x2cd   : > { %v1878_v62 = vrot.slane %v1877_v61, 2 }
 0x2ce   : > { %v1886_v63 = vmax.f32 %v1884_v60, %v1885_v40 }
 0x2cf   : > { %v1879_v2 = vmax.f32 %v1877_v61, %v1878_v62 }
 0x2d0   : > { %v1887_v57 = vrot.slane %v1886_v63, 1 }
 0x2d1   : > { %v1880_v7 = vrot.slane %v1879_v2, 1  ;;  %v2592_v8 = vpop.f32.mrb[4].mxu1 }
 0x2d2   : > { %v1888_v12 = vmax.f32 %v1886_v63, %v1887_v57  ;;  %v1725_v9 = vpop.f32.mrb[5].mxu1 }
 0x2d3   : > { %v1881_v10 = vmax.f32 %v1879_v2, %v1880_v7  ;;  %v2593_v11 = vpop.f32.mrb[6].mxu1 }
 0x2d4   : > { %v1995_v30 = vadd.f32 %v3250_v4, %v1888_v12  ;;  %v1850_v13 = vadd.f32 %v2593_v11, %v3231_v45  ;;  %v1728_v14 = vpop.f32.mrb[7].mxu1 }
 0x2d5   : > { %v1994_v15 = vadd.f32 %v3250_v4, %v1881_v10  ;;  %v1848_v48 = vadd.f32 %v3231_v45, %v1728_v14 }
 0x2d6   : > { %v2011_v16 = vmax.f32 %v1995_v30, 0.0  ;;  %v1896_v17 = vmax.f32 %v2592_v8, %v1850_v13 }
 0x2d7   : > { %v2010_v19 = vmax.f32 %v1994_v15, 0.0  ;;  %v1889_v6 = vmax.f32 %v1725_v9, %v1848_v48 }
 0x2d8   : > { %v2065_v20 = vrot.slane %v2011_v16, 7  ;;  %v1897_v21 = vrot.slane %v1896_v17, 4 }
 0x2d9   : > { %v1890_v23 = vrot.slane %v1889_v6, 4 }
 0x2da   : > { %v1898_v25 = vmax.f32 %v1896_v17, %v1897_v21  ;;  %v2067_v24 = vsel %vm2066_vm6, %v2065_v20, %v2010_v19 }
 0x2db   : > { %v1891_v44 = vmax.f32 %v1889_v6, %v1890_v23 }
 0x2dc   : > { %v1899_v26 = vrot.slane %v1898_v25, 2 }
 0x2dd   : > { %v1892_v0 = vrot.slane %v1891_v44, 2 }
 0x2de   : > { %v1900_v51 = vmax.f32 %v1898_v25, %v1899_v26 }
 0x2df   : > { %v1893_v27 = vmax.f32 %v1891_v44, %v1892_v0 }
 0x2e0   : > { %v1901_v28 = vrot.slane %v1900_v51, 1 }
 0x2e1   : > { %v1894_v29 = vrot.slane %v1893_v27, 1  ;;  %v2596_v31 = vpop.f32.mrb[8].mxu1 }
 0x2e2   : > { %v1902_v32 = vmax.f32 %v1900_v51, %v1901_v28  ;;  %v1741_v33 = vpop.f32.mrb[9].mxu1 }
 0x2e3   : > { %v1895_v35 = vmax.f32 %v1893_v27, %v1894_v29  ;;  %v2597_v36 = vpop.f32.mrb[10].mxu1 }
 0x2e4   : > { %v1997_v37 = vadd.f32 %v3250_v4, %v1902_v32  ;;  %v1854_v1 = vadd.f32 %v2597_v36, %v3231_v45  ;;  %v1744_v39 = vpop.f32.mrb[11].mxu1 }
 0x2e5   : > { %v1996_v42 = vadd.f32 %v3250_v4, %v1895_v35  ;;  %v1852_v43 = vadd.f32 %v3231_v45, %v1744_v39 }
 0x2e6   : > { %v2013_v18 = vmax.f32 %v1997_v37, 0.0  ;;  %v1910_v38 = vmax.f32 %v2596_v31, %v1854_v1 }
 0x2e7   : > { %v2012_v41 = vmax.f32 %v1996_v42, 0.0  ;;  %v1903_v3 = vmax.f32 %v1741_v33, %v1852_v43 }
 0x2e8   : > { %v1911_v34 = vrot.slane %v1910_v38, 4  ;;  %v2071_v49 = vrot.slane %v2013_v18, 5 }
 0x2e9   : > { %v2068_v46 = vrot.slane %v2012_v41, 6  ;;  %v1904_v47 = vrot.slane %v1903_v3, 4 }
 0x2ea   : > { %v1912_v50 = vmax.f32 %v1910_v38, %v1911_v34 }
 0x2eb   : > { %v1905_v52 = vmax.f32 %v1903_v3, %v1904_v47  ;;  %v2070_v53 = vsel %vm2069_vm7, %v2068_v46, %v2067_v24 }
 0x2ec   : > { %v1913_v54 = vrot.slane %v1912_v50, 2  ;;  %v2073_v5 = vsel %vm2072_vm8, %v2071_v49, %v2070_v53 }
 0x2ed   : > { %v1906_v55 = vrot.slane %v1905_v52, 2 }
 0x2ee   : > { %v1914_v56 = vmax.f32 %v1912_v50, %v1913_v54 }
 0x2ef   : > { %v1907_v58 = vmax.f32 %v1905_v52, %v1906_v55 }
 0x2f0   : > { %v1915_v22 = vrot.slane %v1914_v56, 1 }
 0x2f1   : > { %v1908_v59 = vrot.slane %v1907_v58, 1  ;;  %v2600_v60 = vpop.f32.mrb[12].mxu1 }
 0x2f2   : > { %v1916_v61 = vmax.f32 %v1914_v56, %v1915_v22  ;;  %v1757_v40 = vpop.f32.mrb[13].mxu1 }
 0x2f3   : > { %v1909_v62 = vmax.f32 %v1907_v58, %v1908_v59  ;;  %v2601_v63 = vpop.f32.mrb[14].mxu1 }
 0x2f4   : > { %v1999_v2 = vadd.f32 %v3250_v4, %v1916_v61  ;;  %v1858_v57 = vadd.f32 %v2601_v63, %v3231_v45  ;;  %v1760_v7 = vpop.f32.mrb[15].mxu1 }
 0x2f5   : > { %v1998_v8 = vadd.f32 %v3250_v4, %v1909_v62  ;;  %v1856_v12 = vadd.f32 %v3231_v45, %v1760_v7 }
 0x2f6   : > { %v2015_v9 = vmax.f32 %v1999_v2, 0.0  ;;  %v1924_v10 = vmax.f32 %v2600_v60, %v1858_v57 }
 0x2f7   : > { %v2014_v11 = vmax.f32 %v1998_v8, 0.0  ;;  %v1917_v30 = vmax.f32 %v1757_v40, %v1856_v12 }
 0x2f8   : > { %v1925_v13 = vrot.slane %v1924_v10, 4  ;;  %v2077_v16 = vrot.slane %v2015_v9, 3 }
 0x2f9   : > { %v2074_v14 = vrot.slane %v2014_v11, 4  ;;  %v1918_v15 = vrot.slane %v1917_v30, 4 }
 0x2fa   : > { %v1926_v48 = vmax.f32 %v1924_v10, %v1925_v13 }
 0x2fb   : > { %v1919_v17 = vmax.f32 %v1917_v30, %v1918_v15  ;;  %v2076_v19 = vsel %vm2075_vm9, %v2074_v14, %v2073_v5 }
 0x2fc   : > { %v1927_v6 = vrot.slane %v1926_v48, 2  ;;  %v2079_v20 = vsel %vm2078_vm10, %v2077_v16, %v2076_v19 }
 0x2fd   : > { %v1920_v21 = vrot.slane %v1919_v17, 2 }
 0x2fe   : > { %v1928_v23 = vmax.f32 %v1926_v48, %v1927_v6 }
 0x2ff   : > { %v1921_v25 = vmax.f32 %v1919_v17, %v1920_v21 }
 0x300   : > { %v1929_v24 = vrot.slane %v1928_v23, 1 }
 0x301   : > { %v1922_v44 = vrot.slane %v1921_v25, 1  ;;  %v2604_v26 = vpop.f32.mrb[16].mxu1 }
 0x302   : > { %v1930_v0 = vmax.f32 %v1928_v23, %v1929_v24  ;;  %v1773_v51 = vpop.f32.mrb[17].mxu1 }
 0x303   : > { %v1923_v27 = vmax.f32 %v1921_v25, %v1922_v44  ;;  %v2605_v28 = vpop.f32.mrb[18].mxu1 }
 0x304   : > { %v1862_v29 = vadd.f32 %v2605_v28, %v3231_v45  ;;  %v1776_v31 = vpop.f32.mrb[19].mxu1  ;;  %v2001_v32 = vadd.f32 %v3250_v4, %v1930_v0 }
 0x305   : > { %v1860_v33 = vadd.f32 %v3231_v45, %v1776_v31  ;;  %v2000_v35 = vadd.f32 %v3250_v4, %v1923_v27 }
 0x306   : > { %v1938_v36 = vmax.f32 %v2604_v26, %v1862_v29  ;;  %v2017_v37 = vmax.f32 %v2001_v32, 0.0 }
 0x307   : > { %v1931_v1 = vmax.f32 %v1773_v51, %v1860_v33  ;;  %v2016_v39 = vmax.f32 %v2000_v35, 0.0 }
 0x308   : > { %v1939_v42 = vrot.slane %v1938_v36, 4  ;;  %v2083_v41 = vrot.slane %v2017_v37, 1 }
 0x309   : > { %v1932_v43 = vrot.slane %v1931_v1, 4  ;;  %v2080_v18 = vrot.slane %v2016_v39, 2 }
 0x30a   : > { %v1940_v38 = vmax.f32 %v1938_v36, %v1939_v42 }
 0x30b   : > { %v1933_v3 = vmax.f32 %v1931_v1, %v1932_v43  ;;  %v2082_v34 = vsel %vm2081_vm11, %v2080_v18, %v2079_v20 }
 0x30c   : > { %v1941_v46 = vrot.slane %v1940_v38, 2  ;;  %v2085_v47 = vsel %vm2084_vm12, %v2083_v41, %v2082_v34 }
 0x30d   : > { %v1934_v49 = vrot.slane %v1933_v3, 2  ;;  %2650 = vmatprep.mubr.f32.mxu1 %v2085_v47 }
 0x30e   : > { %v1942_v50 = vmax.f32 %v1940_v38, %v1941_v46 }
 0x30f   : > { %v1935_v52 = vmax.f32 %v1933_v3, %v1934_v49 }
 0x310   : > { %v1943_v53 = vrot.slane %v1942_v50, 1 }
 0x311   : > { %v1936_v54 = vrot.slane %v1935_v52, 1  ;;  %v2608_v5 = vpop.f32.mrb[20].mxu1 }
 0x312   : > { %v1944_v55 = vmax.f32 %v1942_v50, %v1943_v53  ;;  %v1789_v56 = vpop.f32.mrb[21].mxu1 }
 0x313   : > { %v1937_v58 = vmax.f32 %v1935_v52, %v1936_v54  ;;  %v2609_v22 = vpop.f32.mrb[22].mxu1 }
 0x314   : > { %v2003_v59 = vadd.f32 %v3250_v4, %v1944_v55  ;;  %v1866_v60 = vadd.f32 %v2609_v22, %v3231_v45  ;;  %v1792_v61 = vpop.f32.mrb[23].mxu1 }
 0x315   : > { %v2002_v40 = vadd.f32 %v3250_v4, %v1937_v58  ;;  %v1864_v62 = vadd.f32 %v3231_v45, %v1792_v61 }
 0x316   : > { %v2019_v63 = vmax.f32 %v2003_v59, 0.0  ;;  %v1952_v2 = vmax.f32 %v2608_v5, %v1866_v60 }
 0x317   : > { %v2018_v57 = vmax.f32 %v2002_v40, 0.0  ;;  %v1945_v7 = vmax.f32 %v1789_v56, %v1864_v62 }
 0x318   : > { %v2086_v8 = vrot.slane %v2019_v63, 7  ;;  %v1953_v12 = vrot.slane %v1952_v2, 4 }
 0x319   : > { %v1946_v9 = vrot.slane %v1945_v7, 4 }
 0x31a   : > { %v2087_v10 = vsel %vm2066_vm6, %v2086_v8, %v2018_v57  ;;  %v1954_v11 = vmax.f32 %v1952_v2, %v1953_v12 }
 0x31b   : > { %v1947_v30 = vmax.f32 %v1945_v7, %v1946_v9 }
 0x31c   : > { %v1955_v13 = vrot.slane %v1954_v11, 2 }
 0x31d   : > { %v1948_v14 = vrot.slane %v1947_v30, 2 }
 0x31e   : > { %v1956_v15 = vmax.f32 %v1954_v11, %v1955_v13 }
 0x31f   : > { %v1949_v48 = vmax.f32 %v1947_v30, %v1948_v14 }
 0x320   : > { %v1957_v16 = vrot.slane %v1956_v15, 1 }
 0x321   : > { %v1950_v17 = vrot.slane %v1949_v48, 1  ;;  %v2612_v19 = vpop.f32.mrb[24].mxu1 }
 0x322   : > { %v1958_v6 = vmax.f32 %v1956_v15, %v1957_v16  ;;  %v1805_v20 = vpop.f32.mrb[25].mxu1 }
 0x323   : > { %v1951_v21 = vmax.f32 %v1949_v48, %v1950_v17  ;;  %v2613_v23 = vpop.f32.mrb[26].mxu1 }
 0x324   : > { %v2005_v25 = vadd.f32 %v3250_v4, %v1958_v6  ;;  %v1870_v24 = vadd.f32 %v2613_v23, %v3231_v45  ;;  %v1808_v44 = vpop.f32.mrb[27].mxu1 }
 0x325   : > { %v2004_v26 = vadd.f32 %v3250_v4, %v1951_v21  ;;  %v1868_v0 = vadd.f32 %v3231_v45, %v1808_v44  ;;  %v2405_v21 = vld [vmem:[%s3312_s5] ss:$0 sm:$0xff] }
 0x326   : > { %v2021_v51 = vmax.f32 %v2005_v25, 0.0  ;;  %v1966_v27 = vmax.f32 %v2612_v19, %v1870_v24 }
 0x327   : > { %v2020_v28 = vmax.f32 %v2004_v26, 0.0  ;;  %v1959_v29 = vmax.f32 %v1805_v20, %v1868_v0 }
 0x328   : > { %v1967_v31 = vrot.slane %v1966_v27, 4  ;;  %v2090_v35 = vrot.slane %v2021_v51, 5 }
 0x329   : > { %v2088_v32 = vrot.slane %v2020_v28, 6  ;;  %v1960_v33 = vrot.slane %v1959_v29, 4 }
 0x32a   : > { %v1968_v36 = vmax.f32 %v1966_v27, %v1967_v31 }
 0x32b   : > { %v2089_v37 = vsel %vm2069_vm7, %v2088_v32, %v2087_v10  ;;  %v1961_v1 = vmax.f32 %v1959_v29, %v1960_v33 }
 0x32c   : > { %v1969_v39 = vrot.slane %v1968_v36, 2  ;;  %v2091_v42 = vsel %vm2072_vm8, %v2090_v35, %v2089_v37 }
 0x32d   : > { %v1962_v43 = vrot.slane %v1961_v1, 2 }
 0x32e   : > { %v1970_v18 = vmax.f32 %v1968_v36, %v1969_v39 }
 0x32f   : > { %v1963_v38 = vmax.f32 %v1961_v1, %v1962_v43 }
 0x330   : > { %v1971_v41 = vrot.slane %v1970_v18, 1 }
 0x331   : > { %v1964_v3 = vrot.slane %v1963_v38, 1  ;;  %v2616_v34 = vpop.f32.mrb[28].mxu1 }
 0x332   : > { %v1972_v46 = vmax.f32 %v1970_v18, %v1971_v41  ;;  %v1821_v47 = vpop.f32.mrb[29].mxu1 }
 0x333   : > { %v1965_v49 = vmax.f32 %v1963_v38, %v1964_v3  ;;  %v2617_v50 = vpop.f32.mrb[30].mxu1 }
 0x334   : > { %v2007_v52 = vadd.f32 %v3250_v4, %v1972_v46  ;;  %v1874_v53 = vadd.f32 %v2617_v50, %v3231_v45  ;;  %v1824_v54 = vpop.f32.mrb[31].mxu1 }
 0x335   : > { %v2006_v5 = vadd.f32 %v3250_v4, %v1965_v49  ;;  %v1872_v55 = vadd.f32 %v3231_v45, %v1824_v54 }
 0x336   : > { %v2023_v56 = vmax.f32 %v2007_v52, 0.0  ;;  %v1980_v58 = vmax.f32 %v2616_v34, %v1874_v53 }
 0x337   : > { %v2022_v22 = vmax.f32 %v2006_v5, 0.0  ;;  %v1973_v59 = vmax.f32 %v1821_v47, %v1872_v55 }
 0x338   : > { %v1981_v60 = vrot.slane %v1980_v58, 4  ;;  %v2094_v62 = vrot.slane %v2023_v56, 3 }
 0x339   : > { %v2092_v61 = vrot.slane %v2022_v22, 4  ;;  %v1974_v40 = vrot.slane %v1973_v59, 4 }
 0x33a   : > { %v1982_v63 = vmax.f32 %v1980_v58, %v1981_v60 }
 0x33b   : > { %v1975_v2 = vmax.f32 %v1973_v59, %v1974_v40  ;;  %v2093_v57 = vsel %vm2075_vm9, %v2092_v61, %v2091_v42 }
 0x33c   : > { %v1983_v7 = vrot.slane %v1982_v63, 2  ;;  %v2095_v8 = vsel %vm2078_vm10, %v2094_v62, %v2093_v57 }
 0x33d   : > { %v1976_v12 = vrot.slane %v1975_v2, 2 }
 0x33e   : > { %v1984_v9 = vmax.f32 %v1982_v63, %v1983_v7 }
 0x33f   : > { %v1977_v10 = vmax.f32 %v1975_v2, %v1976_v12 }
 0x340   : > { %v1985_v45 = vrot.slane %v1984_v9, 1 }
 0x341   : > { %v1978_v11 = vrot.slane %v1977_v10, 1 }
 0x342   : > { %v1986_v30 = vmax.f32 %v1984_v9, %v1985_v45 }
 0x343   : > { %v1979_v13 = vmax.f32 %v1977_v10, %v1978_v11 }
 0x344   : > { %v2009_v14 = vadd.f32 %v3250_v4, %v1986_v30 }
 0x345   : > { %v2008_v15 = vadd.f32 %v3250_v4, %v1979_v13 }
 0x346   : > { %v2025_v48 = vmax.f32 %v2009_v14, 0.0 }
 0x347   : > { %v2024_v16 = vmax.f32 %v2008_v15, 0.0 }
 0x348   : > { %v2098_v19 = vrot.slane %v2025_v48, 1 }
 0x349   : > { %v2096_v17 = vrot.slane %v2024_v16, 2 }
 0x34b   : > { %v2097_v6 = vsel %vm2081_vm11, %v2096_v17, %v2095_v8 }
 0x34c   : > { %v2099_v20 = vsel %vm2084_vm12, %v2098_v19, %v2097_v6 }
 0x34d   : > { %2651 = vmatmul.mubr.f32.vlgmr.msra.gmra.mrb[32].mxu1 %v2099_v20 }
 0x420   : > { %v2652_v23 = vpop.f32.mrb[32].mxu1 }
 0x421   : > { %v2168_v4 = vpop.f32.mrb[33].mxu1  ;;  %v2174_v24 = vadd.f32 %v2652_v23, %v2405_v21 }
 0x422   : > { %v2169_v25 = vadd.f32 %v2405_v21, %v2168_v4 }
 0x423   : > { %2178 = vst [vmem:[%s253_s13 + $0x8] sm:$0xff] %v2174_v24 }
 0x424   : > { %2177 = vst [vmem:[%s253_s13] sm:$0xff] %v2169_v25 }
 0x425 PF: > { %s16_s21 = sadd.s32 1, %s2719_s21  }
 0x426   : > { %p13_p4 = scmp.ge.s32.totalorder %s16_s21, 4  }
 0x428   :  { %15 = sbr.rel (!%p13_p4) target bundleno = 1 (0x1), region = 74 }

</bundles_post_ra>
